<compile_context>
chip_gen: v5e
topology: v5e:2x2
jax: 0.10.0
libtpu: 0.0.40
codegen_flags: <defaults>
</compile_context>

<pallas_src>
import functools
from typing import NamedTuple

import jax
import jax.numpy as jnp
from jax.experimental import pallas as pl
from jax.experimental.pallas import tpu as pltpu

_NEG_BIG = -1e30   # bias for padded class lanes -> exp underflows to 0
_LANE = 128
_SUBLANE = 8
_TM_MAX = 1024     # max batch-tile rows


def _round_up(a, b):
    return (a + b - 1) // b * b


class MLPParams(NamedTuple):
    w1: jax.Array        # [F_in, 256]  bf16
    b1: jax.Array        # [1, 256]     f32
    w2: jax.Array        # [256, 256]   bf16
    b2: jax.Array        # [1, 256]     f32
    w3: jax.Array        # [256, C_pad] bf16 (class dim padded to 128 lanes)
    b3: jax.Array        # [1, C_pad]   f32  (padded lanes = -1e30)
    n_classes: int       # python int (static)


def prepare_mlp_params(w1, b1, w2, b2, w3, b3):
    """One-time weight prep (cast/pad), hoisted out of the per-call path."""
    n_classes = w3.shape[1]
    c_pad = _round_up(max(n_classes, _LANE), _LANE)
    w1_bf = jnp.asarray(w1, jnp.bfloat16)
    w2_bf = jnp.asarray(w2, jnp.bfloat16)
    w3_bf = jnp.pad(jnp.asarray(w3, jnp.float32),
                    ((0, 0), (0, c_pad - n_classes))).astype(jnp.bfloat16)
    b1_f = jnp.asarray(b1, jnp.float32).reshape(1, -1)
    b2_f = jnp.asarray(b2, jnp.float32).reshape(1, -1)
    b3_f = jnp.pad(jnp.asarray(b3, jnp.float32).reshape(1, -1),
                   ((0, 0), (0, c_pad - n_classes)),
                   constant_values=_NEG_BIG)
    return MLPParams(w1_bf, b1_f, w2_bf, b2_f, w3_bf, b3_f, n_classes)


def _mlp_kernel(x_ref, w1_ref, b1_ref, w2_ref, b2_ref, w3_ref, b3_ref, out_ref):
    # x tile arrives in native f32; bf16 cast on the VPU (filler under MXU slack).
    x = x_ref[...].astype(jnp.bfloat16)

    # Linear 1 + (Dropout = identity in eval) + ReLU. f32 MXU accumulation.
    h1 = jnp.dot(x, w1_ref[...], preferred_element_type=jnp.float32)       # [TM, 256]
    h1 = jnp.maximum(h1 + b1_ref[...], 0.0)

    # Linear 2 + (Dropout = identity) + ReLU
    h2 = jnp.dot(h1.astype(jnp.bfloat16), w2_ref[...],
                 preferred_element_type=jnp.float32)                       # [TM, 256]
    h2 = jnp.maximum(h2 + b2_ref[...], 0.0)

    # Linear 3 -> logits (class dim lane-padded to 128; padded lanes get -1e30 bias)
    logits = jnp.dot(h2.astype(jnp.bfloat16), w3_ref[...],
                     preferred_element_type=jnp.float32)                   # [TM, 128]
    logits = logits + b3_ref[...]

    # LogSoftmax along classes; padded lanes contribute exp(~-1e30) = 0.
    m = jnp.max(logits, axis=-1, keepdims=True)
    shifted = logits - m
    lse = jnp.log(jnp.sum(jnp.exp(shifted), axis=-1, keepdims=True))
    out_ref[...] = shifted - lse


def _make_forward(single_buffer_weights: bool):
    resident_kw = {}
    if single_buffer_weights:
        # Constant index_map -> never re-DMA'd; single buffer halves their VMEM.
        resident_kw = dict(pipeline_mode=pl.Buffered(1))

    @functools.partial(jax.jit, static_argnames=("n_classes",))
    def forward(x_nchw, w1, b1, w2, b2, w3, b3, *, n_classes):
        B = x_nchw.shape[0]
        x_flat = x_nchw.reshape(B, -1).astype(jnp.float32)   # nn.Flatten; stays f32
        F_in = x_flat.shape[1]
        H1 = w1.shape[1]
        H2 = w2.shape[1]
        C_pad = w3.shape[1]

        # --- batch tiling (all static) --------------------------------------
        # Tiles of up to 1024 rows (85%+ of HBM roofline); once the batch is
        # big enough, force >=2 grid steps so v7x's 2 TensorCores both get work.
        B_su = _round_up(B, _SUBLANE)
        if B_su <= 512:
            TM = B_su
        else:
            n_tiles = max(2, pl.cdiv(B_su, _TM_MAX))
            TM = min(_TM_MAX, _round_up(pl.cdiv(B_su, n_tiles), _SUBLANE))
        B_pad = _round_up(B, TM)
        if B_pad != B:   # pad only when the tile doesn't divide the batch
            x_flat = jnp.pad(x_flat, ((0, B_pad - B), (0, 0)))
        grid = (B_pad // TM,)

        # --- cost hint for the XLA scheduler --------------------------------
        flops = 2 * B_pad * (F_in * H1 + H1 * H2 + H2 * C_pad)
        bytes_accessed = (B_pad * F_in * 4                               # x (f32)
                          + (F_in * H1 + H1 * H2 + H2 * C_pad) * 2      # weights bf16
                          + (H1 + H2 + C_pad) * 4                       # biases f32
                          + B_pad * C_pad * 4)                          # out f32
        cost = pl.CostEstimate(flops=flops,
                               transcendentals=B_pad * (C_pad + 1),
                               bytes_accessed=bytes_accessed)

        out = pl.pallas_call(
            _mlp_kernel,
            out_shape=jax.ShapeDtypeStruct((B_pad, C_pad), jnp.float32),
            grid=grid,
            in_specs=[
                pl.BlockSpec((TM, F_in), lambda i: (i, 0)),                 # x: streamed
                pl.BlockSpec((F_in, H1), lambda i: (0, 0), **resident_kw),  # w1 resident
                pl.BlockSpec((1, H1), lambda i: (0, 0), **resident_kw),     # b1
                pl.BlockSpec((H1, H2), lambda i: (0, 0), **resident_kw),    # w2
                pl.BlockSpec((1, H2), lambda i: (0, 0), **resident_kw),     # b2
                pl.BlockSpec((H2, C_pad), lambda i: (0, 0), **resident_kw), # w3 (padded)
                pl.BlockSpec((1, C_pad), lambda i: (0, 0), **resident_kw),  # b3 (padded)
            ],
            out_specs=pl.BlockSpec((TM, C_pad), lambda i: (i, 0)),
            compiler_params=pltpu.CompilerParams(
                dimension_semantics=("parallel",),
                vmem_limit_bytes=32 * 1024 * 1024),
            cost_estimate=cost,
        )(x_flat, w1, b1, w2, b2, w3, b3)

        # Strip batch padding and class-lane padding.
        return out[:B, :n_classes]

    return forward


_FORWARD = {True: _make_forward(True), False: _make_forward(False)}
_SINGLE_BUFFER_OK = None   # decided on first call


def mlp_forward(x_nchw, params: MLPParams):
    """Fused MLP forward. `params` from prepare_mlp_params()."""
    global _SINGLE_BUFFER_OK
    args = (x_nchw, params.w1, params.b1, params.w2, params.b2,
            params.w3, params.b3)
    if _SINGLE_BUFFER_OK is None:
        try:
            out = _FORWARD[True](*args, n_classes=params.n_classes)
            jax.block_until_ready(out)
            _SINGLE_BUFFER_OK = True
            return out
        except Exception:
            # pipeline_mode not supported in this jax build -> default buffering.
            _SINGLE_BUFFER_OK = False
    return _FORWARD[_SINGLE_BUFFER_OK](*args, n_classes=params.n_classes)


def _init_linear(key, fan_in, fan_out):
    # Deterministic init mimicking torch.nn.Linear default:
    # U(-1/sqrt(fan_in), +1/sqrt(fan_in))
    kw, kb = jax.random.split(key)
    bound = 1.0 / (fan_in ** 0.5)
    w = jax.random.uniform(kw, (fan_in, fan_out), jnp.float32, -bound, bound)
    b = jax.random.uniform(kb, (1, fan_out), jnp.float32, -bound, bound)
    return w, b


if __name__ == "__main__":
    key = jax.random.PRNGKey(0)
    k_x, k1, k2, k3 = jax.random.split(key, 4)

    # Small NCHW input consistent with Flatten(): batch=2, channels=4, spatial=16x16
    B, C, H, W = 2, 4, 16, 16
    input_features = C * H * W   # 1024
    hidden = 256
    n_classes = 10

    x = jax.random.normal(k_x, (B, C, H, W), jnp.float32)
    w1, b1 = _init_linear(k1, input_features, hidden)
    w2, b2 = _init_linear(k2, hidden, hidden)
    w3, b3 = _init_linear(k3, hidden, n_classes)

    params = prepare_mlp_params(w1, b1, w2, b2, w3, b3)
    out = mlp_forward(x, params)
    jax.block_until_ready(out)

    assert out.shape == (B, n_classes), out.shape

    # Pure-JAX reference with matching bf16 weight/activation numerics.
    def ref_forward(x_nchw):
        xf = x_nchw.reshape(x_nchw.shape[0], -1).astype(jnp.bfloat16).astype(jnp.float32)
        wa = w1.astype(jnp.bfloat16).astype(jnp.float32)
        wb = w2.astype(jnp.bfloat16).astype(jnp.float32)
        wc = w3.astype(jnp.bfloat16).astype(jnp.float32)
        h = jnp.maximum(xf @ wa + b1.reshape(1, -1), 0.0)
        h = jnp.maximum(h.astype(jnp.bfloat16).astype(jnp.float32) @ wb + b2.reshape(1, -1), 0.0)
        lg = h.astype(jnp.bfloat16).astype(jnp.float32) @ wc + b3.reshape(1, -1)
        return jax.nn.log_softmax(lg, axis=1)

    ref = ref_forward(x)
    # log-softmax rows exponentiate-sum to 1, finite, and match the reference.
    assert jnp.allclose(jnp.sum(jnp.exp(out), axis=1), 1.0, atol=1e-3)
    assert bool(jnp.all(jnp.isfinite(out)))
    assert jnp.allclose(out, ref, atol=2e-2, rtol=2e-2), float(jnp.max(jnp.abs(out - ref)))
    print("KERNEL_OK")
</pallas_src>

<mosaic_0001>
module attributes {stable_mosaic.version = 11 : i64} {
  func.func @_mlp_kernel(%arg0: i32, %arg1: memref<8x1024xf32, #tpu.memory_space<vmem>>, %arg2: memref<1024x256xbf16, #tpu.memory_space<vmem>>, %arg3: memref<1x256xf32, #tpu.memory_space<vmem>>, %arg4: memref<256x256xbf16, #tpu.memory_space<vmem>>, %arg5: memref<1x256xf32, #tpu.memory_space<vmem>>, %arg6: memref<256x128xbf16, #tpu.memory_space<vmem>>, %arg7: memref<1x128xf32, #tpu.memory_space<vmem>>, %arg8: memref<8x128xf32, #tpu.memory_space<vmem>>) attributes {dimension_semantics = [#tpu.dimension_semantics<parallel>], iteration_bounds = array<i64: 1>, scalar_prefetch = 0 : i64, scratch_operands = 0 : i64, tpu.core_type = #tpu.core_type<tc>, window_params = [{transform_indices = @transform_0, window_bounds = array<i64: 8, 1024>}, {pipeline_mode = #tpu.pipeline_mode<synchronous>, transform_indices = @transform_1, window_bounds = array<i64: 1024, 256>}, {pipeline_mode = #tpu.pipeline_mode<synchronous>, transform_indices = @transform_2, window_bounds = array<i64: 1, 256>}, {pipeline_mode = #tpu.pipeline_mode<synchronous>, transform_indices = @transform_3, window_bounds = array<i64: 256, 256>}, {pipeline_mode = #tpu.pipeline_mode<synchronous>, transform_indices = @transform_4, window_bounds = array<i64: 1, 256>}, {pipeline_mode = #tpu.pipeline_mode<synchronous>, transform_indices = @transform_5, window_bounds = array<i64: 256, 128>}, {pipeline_mode = #tpu.pipeline_mode<synchronous>, transform_indices = @transform_6, window_bounds = array<i64: 1, 128>}, {transform_indices = @transform_7, window_bounds = array<i64: 8, 128>}]} {
    %c0 = arith.constant 0 : index
    %c0_0 = arith.constant 0 : index
    %0 = vector.load %arg1[%c0, %c0_0] : memref<8x1024xf32, #tpu.memory_space<vmem>>, vector<8x1024xf32>
    %1 = arith.truncf %0 : vector<8x1024xf32> to vector<8x1024xbf16>
    %c0_1 = arith.constant 0 : index
    %c0_2 = arith.constant 0 : index
    %2 = vector.load %arg2[%c0_1, %c0_2] : memref<1024x256xbf16, #tpu.memory_space<vmem>>, vector<1024x256xbf16>
    %cst = arith.constant dense<0.000000e+00> : vector<8x256xf32>
    %3 = tpu.matmul %1, %2, %cst {dimension_numbers = #tpu.dot_dimension_numbers<[1], [0], [0], [1], [0, 0, 1, 1], [], []>} : vector<8x1024xbf16>, vector<1024x256xbf16>, vector<8x256xf32> -> vector<8x256xf32>
    %c0_3 = arith.constant 0 : index
    %c0_4 = arith.constant 0 : index
    %4 = vector.load %arg3[%c0_3, %c0_4] : memref<1x256xf32, #tpu.memory_space<vmem>>, vector<1x256xf32>
    %5 = vector.broadcast %4 : vector<1x256xf32> to vector<8x256xf32>
    %6 = arith.addf %3, %5 : vector<8x256xf32>
    %cst_5 = arith.constant 0.000000e+00 : f32
    %7 = vector.broadcast %cst_5 : f32 to vector<8x256xf32>
    %8 = arith.maximumf %6, %7 : vector<8x256xf32>
    %9 = arith.truncf %8 : vector<8x256xf32> to vector<8x256xbf16>
    %c0_6 = arith.constant 0 : index
    %c0_7 = arith.constant 0 : index
    %10 = vector.load %arg4[%c0_6, %c0_7] : memref<256x256xbf16, #tpu.memory_space<vmem>>, vector<256x256xbf16>
    %cst_8 = arith.constant dense<0.000000e+00> : vector<8x256xf32>
    %11 = tpu.matmul %9, %10, %cst_8 {dimension_numbers = #tpu.dot_dimension_numbers<[1], [0], [0], [1], [0, 0, 1, 1], [], []>} : vector<8x256xbf16>, vector<256x256xbf16>, vector<8x256xf32> -> vector<8x256xf32>
    %c0_9 = arith.constant 0 : index
    %c0_10 = arith.constant 0 : index
    %12 = vector.load %arg5[%c0_9, %c0_10] : memref<1x256xf32, #tpu.memory_space<vmem>>, vector<1x256xf32>
    %13 = vector.broadcast %12 : vector<1x256xf32> to vector<8x256xf32>
    %14 = arith.addf %11, %13 : vector<8x256xf32>
    %cst_11 = arith.constant 0.000000e+00 : f32
    %15 = vector.broadcast %cst_11 : f32 to vector<8x256xf32>
    %16 = arith.maximumf %14, %15 : vector<8x256xf32>
    %17 = arith.truncf %16 : vector<8x256xf32> to vector<8x256xbf16>
    %c0_12 = arith.constant 0 : index
    %c0_13 = arith.constant 0 : index
    %18 = vector.load %arg6[%c0_12, %c0_13] : memref<256x128xbf16, #tpu.memory_space<vmem>>, vector<256x128xbf16>
    %cst_14 = arith.constant dense<0.000000e+00> : vector<8x128xf32>
    %19 = tpu.matmul %17, %18, %cst_14 {dimension_numbers = #tpu.dot_dimension_numbers<[1], [0], [0], [1], [0, 0, 1, 1], [], []>} : vector<8x256xbf16>, vector<256x128xbf16>, vector<8x128xf32> -> vector<8x128xf32>
    %c0_15 = arith.constant 0 : index
    %c0_16 = arith.constant 0 : index
    %20 = vector.load %arg7[%c0_15, %c0_16] : memref<1x128xf32, #tpu.memory_space<vmem>>, vector<1x128xf32>
    %21 = vector.broadcast %20 : vector<1x128xf32> to vector<8x128xf32>
    %22 = arith.addf %19, %21 : vector<8x128xf32>
    %cst_17 = arith.constant dense<0xFF800000> : vector<8xf32>
    %23 = vector.multi_reduction <maximumf>, %22, %cst_17 [1] : vector<8x128xf32> to vector<8xf32>
    %24 = vector.shape_cast %23 : vector<8xf32> to vector<8x1xf32>
    %25 = vector.broadcast %24 : vector<8x1xf32> to vector<8x128xf32>
    %26 = arith.subf %22, %25 : vector<8x128xf32>
    %27 = math.exp %26 : vector<8x128xf32>
    %cst_18 = arith.constant dense<0.000000e+00> : vector<8xf32>
    %28 = vector.multi_reduction <add>, %27, %cst_18 [1] : vector<8x128xf32> to vector<8xf32>
    %29 = vector.shape_cast %28 : vector<8xf32> to vector<8x1xf32>
    %30 = math.log %29 : vector<8x1xf32>
    %31 = vector.broadcast %30 : vector<8x1xf32> to vector<8x128xf32>
    %32 = arith.subf %26, %31 : vector<8x128xf32>
    %c0_19 = arith.constant 0 : index
    %c0_20 = arith.constant 0 : index
    %33 = vector.load %arg8[%c0_19, %c0_20] : memref<8x128xf32, #tpu.memory_space<vmem>>, vector<8x128xf32>
    tpu.vector_store %arg8[%c0_19, %c0_20], %32 {strides = array<i32>} : memref<8x128xf32, #tpu.memory_space<vmem>>, vector<8x128xf32>,
    return
  }
  func.func @transform_0(%arg0: i32) -> (i32, i32) {
    %c0_i32 = arith.constant 0 : i32
    %c0_i32_0 = arith.constant 0 : i32
    return %arg0, %c0_i32 : i32, i32
  }
  func.func @transform_1(%arg0: i32) -> (i32, i32) {
    %c0_i32 = arith.constant 0 : i32
    %c0_i32_0 = arith.constant 0 : i32
    %c0_i32_1 = arith.constant 0 : i32
    return %c0_i32, %c0_i32_0 : i32, i32
  }
  func.func @transform_2(%arg0: i32) -> (i32, i32) {
    %c0_i32 = arith.constant 0 : i32
    %c0_i32_0 = arith.constant 0 : i32
    %c0_i32_1 = arith.constant 0 : i32
    return %c0_i32, %c0_i32_0 : i32, i32
  }
  func.func @transform_3(%arg0: i32) -> (i32, i32) {
    %c0_i32 = arith.constant 0 : i32
    %c0_i32_0 = arith.constant 0 : i32
    %c0_i32_1 = arith.constant 0 : i32
    return %c0_i32, %c0_i32_0 : i32, i32
  }
  func.func @transform_4(%arg0: i32) -> (i32, i32) {
    %c0_i32 = arith.constant 0 : i32
    %c0_i32_0 = arith.constant 0 : i32
    %c0_i32_1 = arith.constant 0 : i32
    return %c0_i32, %c0_i32_0 : i32, i32
  }
  func.func @transform_5(%arg0: i32) -> (i32, i32) {
    %c0_i32 = arith.constant 0 : i32
    %c0_i32_0 = arith.constant 0 : i32
    %c0_i32_1 = arith.constant 0 : i32
    return %c0_i32, %c0_i32_0 : i32, i32
  }
  func.func @transform_6(%arg0: i32) -> (i32, i32) {
    %c0_i32 = arith.constant 0 : i32
    %c0_i32_0 = arith.constant 0 : i32
    %c0_i32_1 = arith.constant 0 : i32
    return %c0_i32, %c0_i32_0 : i32, i32
  }
  func.func @transform_7(%arg0: i32) -> (i32, i32) {
    %c0_i32 = arith.constant 0 : i32
    %c0_i32_0 = arith.constant 0 : i32
    return %arg0, %c0_i32 : i32, i32
  }
}

module attributes {stable_mosaic.version = 11 : i64} {
  func.func @_mlp_kernel(%arg0: i32, %arg1: memref<8x1024xf32, #tpu.memory_space<vmem>>, %arg2: memref<1024x256xbf16, #tpu.memory_space<vmem>>, %arg3: memref<1x256xf32, #tpu.memory_space<vmem>>, %arg4: memref<256x256xbf16, #tpu.memory_space<vmem>>, %arg5: memref<1x256xf32, #tpu.memory_space<vmem>>, %arg6: memref<256x128xbf16, #tpu.memory_space<vmem>>, %arg7: memref<1x128xf32, #tpu.memory_space<vmem>>, %arg8: memref<8x128xf32, #tpu.memory_space<vmem>>) attributes {dimension_semantics = [#tpu.dimension_semantics<parallel>], iteration_bounds = array<i64: 1>, scalar_prefetch = 0 : i64, scratch_operands = 0 : i64, tpu.core_type = #tpu.core_type<tc>, window_params = [{transform_indices = @transform_0, window_bounds = array<i64: 8, 1024>}, {pipeline_mode = #tpu.pipeline_mode<synchronous>, transform_indices = @transform_1, window_bounds = array<i64: 1024, 256>}, {pipeline_mode = #tpu.pipeline_mode<synchronous>, transform_indices = @transform_2, window_bounds = array<i64: 1, 256>}, {pipeline_mode = #tpu.pipeline_mode<synchronous>, transform_indices = @transform_3, window_bounds = array<i64: 256, 256>}, {pipeline_mode = #tpu.pipeline_mode<synchronous>, transform_indices = @transform_4, window_bounds = array<i64: 1, 256>}, {pipeline_mode = #tpu.pipeline_mode<synchronous>, transform_indices = @transform_5, window_bounds = array<i64: 256, 128>}, {pipeline_mode = #tpu.pipeline_mode<synchronous>, transform_indices = @transform_6, window_bounds = array<i64: 1, 128>}, {transform_indices = @transform_7, window_bounds = array<i64: 8, 128>}]} {
    %c0 = arith.constant 0 : index
    %c0_0 = arith.constant 0 : index
    %0 = vector.load %arg1[%c0, %c0_0] : memref<8x1024xf32, #tpu.memory_space<vmem>>, vector<8x1024xf32>
    %1 = arith.truncf %0 : vector<8x1024xf32> to vector<8x1024xbf16>
    %c0_1 = arith.constant 0 : index
    %c0_2 = arith.constant 0 : index
    %2 = vector.load %arg2[%c0_1, %c0_2] : memref<1024x256xbf16, #tpu.memory_space<vmem>>, vector<1024x256xbf16>
    %cst = arith.constant dense<0.000000e+00> : vector<8x256xf32>
    %3 = tpu.matmul %1, %2, %cst {dimension_numbers = #tpu.dot_dimension_numbers<[1], [0], [0], [1], [0, 0, 1, 1], [], []>} : vector<8x1024xbf16>, vector<1024x256xbf16>, vector<8x256xf32> -> vector<8x256xf32>
    %c0_3 = arith.constant 0 : index
    %c0_4 = arith.constant 0 : index
    %4 = vector.load %arg3[%c0_3, %c0_4] : memref<1x256xf32, #tpu.memory_space<vmem>>, vector<1x256xf32>
    %5 = vector.broadcast %4 : vector<1x256xf32> to vector<8x256xf32>
    %6 = arith.addf %3, %5 : vector<8x256xf32>
    %cst_5 = arith.constant 0.000000e+00 : f32
    %7 = vector.broadcast %cst_5 : f32 to vector<8x256xf32>
    %8 = arith.maximumf %6, %7 : vector<8x256xf32>
    %9 = arith.truncf %8 : vector<8x256xf32> to vector<8x256xbf16>
    %c0_6 = arith.constant 0 : index
    %c0_7 = arith.constant 0 : index
    %10 = vector.load %arg4[%c0_6, %c0_7] : memref<256x256xbf16, #tpu.memory_space<vmem>>, vector<256x256xbf16>
    %cst_8 = arith.constant dense<0.000000e+00> : vector<8x256xf32>
    %11 = tpu.matmul %9, %10, %cst_8 {dimension_numbers = #tpu.dot_dimension_numbers<[1], [0], [0], [1], [0, 0, 1, 1], [], []>} : vector<8x256xbf16>, vector<256x256xbf16>, vector<8x256xf32> -> vector<8x256xf32>
    %c0_9 = arith.constant 0 : index
    %c0_10 = arith.constant 0 : index
    %12 = vector.load %arg5[%c0_9, %c0_10] : memref<1x256xf32, #tpu.memory_space<vmem>>, vector<1x256xf32>
    %13 = vector.broadcast %12 : vector<1x256xf32> to vector<8x256xf32>
    %14 = arith.addf %11, %13 : vector<8x256xf32>
    %cst_11 = arith.constant 0.000000e+00 : f32
    %15 = vector.broadcast %cst_11 : f32 to vector<8x256xf32>
    %16 = arith.maximumf %14, %15 : vector<8x256xf32>
    %17 = arith.truncf %16 : vector<8x256xf32> to vector<8x256xbf16>
    %c0_12 = arith.constant 0 : index
    %c0_13 = arith.constant 0 : index
    %18 = vector.load %arg6[%c0_12, %c0_13] : memref<256x128xbf16, #tpu.memory_space<vmem>>, vector<256x128xbf16>
    %cst_14 = arith.constant dense<0.000000e+00> : vector<8x128xf32>
    %19 = tpu.matmul %17, %18, %cst_14 {dimension_numbers = #tpu.dot_dimension_numbers<[1], [0], [0], [1], [0, 0, 1, 1], [], []>} : vector<8x256xbf16>, vector<256x128xbf16>, vector<8x128xf32> -> vector<8x128xf32>
    %c0_15 = arith.constant 0 : index
    %c0_16 = arith.constant 0 : index
    %20 = vector.load %arg7[%c0_15, %c0_16] : memref<1x128xf32, #tpu.memory_space<vmem>>, vector<1x128xf32>
    %21 = vector.broadcast %20 : vector<1x128xf32> to vector<8x128xf32>
    %22 = arith.addf %19, %21 : vector<8x128xf32>
    %cst_17 = arith.constant dense<0xFF800000> : vector<8xf32>
    %23 = vector.multi_reduction <maximumf>, %22, %cst_17 [1] : vector<8x128xf32> to vector<8xf32>
    %24 = vector.shape_cast %23 : vector<8xf32> to vector<8x1xf32>
    %25 = vector.broadcast %24 : vector<8x1xf32> to vector<8x128xf32>
    %26 = arith.subf %22, %25 : vector<8x128xf32>
    %27 = math.exp %26 : vector<8x128xf32>
    %cst_18 = arith.constant dense<0.000000e+00> : vector<8xf32>
    %28 = vector.multi_reduction <add>, %27, %cst_18 [1] : vector<8x128xf32> to vector<8xf32>
    %29 = vector.shape_cast %28 : vector<8xf32> to vector<8x1xf32>
    %30 = math.log %29 : vector<8x1xf32>
    %31 = vector.broadcast %30 : vector<8x1xf32> to vector<8x128xf32>
    %32 = arith.subf %26, %31 : vector<8x128xf32>
    %c0_19 = arith.constant 0 : index
    %c0_20 = arith.constant 0 : index
    %33 = vector.load %arg8[%c0_19, %c0_20] : memref<8x128xf32, #tpu.memory_space<vmem>>, vector<8x128xf32>
    tpu.vector_store %arg8[%c0_19, %c0_20], %32 {strides = array<i32>} : memref<8x128xf32, #tpu.memory_space<vmem>>, vector<8x128xf32>,
    return
  }
  func.func @transform_0(%arg0: i32) -> (i32, i32) {
    %c0_i32 = arith.constant 0 : i32
    %c0_i32_0 = arith.constant 0 : i32
    return %arg0, %c0_i32 : i32, i32
  }
  func.func @transform_1(%arg0: i32) -> (i32, i32) {
    %c0_i32 = arith.constant 0 : i32
    %c0_i32_0 = arith.constant 0 : i32
    %c0_i32_1 = arith.constant 0 : i32
    return %c0_i32, %c0_i32_0 : i32, i32
  }
  func.func @transform_2(%arg0: i32) -> (i32, i32) {
    %c0_i32 = arith.constant 0 : i32
    %c0_i32_0 = arith.constant 0 : i32
    %c0_i32_1 = arith.constant 0 : i32
    return %c0_i32, %c0_i32_0 : i32, i32
  }
  func.func @transform_3(%arg0: i32) -> (i32, i32) {
    %c0_i32 = arith.constant 0 : i32
    %c0_i32_0 = arith.constant 0 : i32
    %c0_i32_1 = arith.constant 0 : i32
    return %c0_i32, %c0_i32_0 : i32, i32
  }
  func.func @transform_4(%arg0: i32) -> (i32, i32) {
    %c0_i32 = arith.constant 0 : i32
    %c0_i32_0 = arith.constant 0 : i32
    %c0_i32_1 = arith.constant 0 : i32
    return %c0_i32, %c0_i32_0 : i32, i32
  }
  func.func @transform_5(%arg0: i32) -> (i32, i32) {
    %c0_i32 = arith.constant 0 : i32
    %c0_i32_0 = arith.constant 0 : i32
    %c0_i32_1 = arith.constant 0 : i32
    return %c0_i32, %c0_i32_0 : i32, i32
  }
  func.func @transform_6(%arg0: i32) -> (i32, i32) {
    %c0_i32 = arith.constant 0 : i32
    %c0_i32_0 = arith.constant 0 : i32
    %c0_i32_1 = arith.constant 0 : i32
    return %c0_i32, %c0_i32_0 : i32, i32
  }
  func.func @transform_7(%arg0: i32) -> (i32, i32) {
    %c0_i32 = arith.constant 0 : i32
    %c0_i32_0 = arith.constant 0 : i32
    return %arg0, %c0_i32 : i32, i32
  }
}

</mosaic_0001>

<bundles_post_ra>
// kernel: forward.1
= control target key start
LH: loop header
LB: loop body
LE: loop exit
PB: predicated region body
PF: predicated region fallthrough
CT: control target
= control target key end

     0   :  { %12 = vsyncpa [#allocation3], 0  ;;  %s2600_s0 = inlined_call_operand.vmem [shape: f32[8,1024], index: 0, kind: input, shape index: {}]   ;;  %s2601_s1 = inlined_call_operand.hbm [shape: bf16[1024,256], index: 1, kind: input, shape index: {}]   ;;  %s2602_s2 = inlined_call_operand.vmem [shape: f32[1,256], index: 2, kind: input, shape index: {}]   ;;  %s2603_s3 = inlined_call_operand.hbm [shape: bf16[256,256], index: 3, kind: input, shape index: {}]   ;;  %s2604_s4 = inlined_call_operand.vmem [shape: f32[1,256], index: 4, kind: input, shape index: {}]   ;;  %s2605_s5 = inlined_call_operand.vmem [shape: bf16[256,128], index: 5, kind: input, shape index: {}]   ;;  %s2606_s6 = inlined_call_operand.vmem [shape: f32[1,128], index: 6, kind: input, shape index: {}]   ;;  %s2607_s7 = inlined_call_operand.vmem [shape: f32[8,128], index: 7, kind: output, shape index: {}]  }
   0x1   :  { %s20_s26 = sshll.u32 %s2601_s1, 4  ;;  %s21_s26 = int_to_ptr.hbm [resolvable:$true] %s20_s26 }
   0x2   :  { %13 = vsyncpa [#allocation5], 0  ;;  %s2430_s27 = smov [#allocation2]   ;;  %s35_s8 = sshll.u32 %s2603_s3, 4  ;;  %s36_s8 = int_to_ptr.hbm [resolvable:$true] %s35_s8 }
   0x3   :  { %s22_s28 = sshll.u32 %s2430_s27, 4  ;;  %s2431_s9 = smov 128   ;;  %s23_s28 = int_to_ptr.vmem [resolvable:$true] %s22_s28 }
   0x4   :  { %s2432_s10 = smov 8   ;;  %s2433_s11 = smov [#allocation4]  }
   0x5   :  { %28 = dma.hbm_to_vmem [thread:$0]  %s21_s26, 16384, %s23_s28, [#allocation3], %s2431_s9, %s2431_s9, %s2432_s10  }
   0x6   :  { %s37_s12 = sshll.u32 %s2433_s11, 4  ;;  %s38_s12 = int_to_ptr.vmem [resolvable:$true] %s37_s12 }
   0x7   :  { %43 = dma.hbm_to_vmem [thread:$0]  %s36_s8, 4096, %s38_s12, [#allocation5], %s2431_s9, %s2431_s9, %s2432_s10  }
   0x8   :  { %2426 = dma.done.wait [#allocation3], 16384  }
   0x9   :  { %2427 = vsyncadd [#allocation3], 4294950912 }
   0xa   :  { %2428 = dma.done.wait [#allocation5], 4096  }
   0xb   :  { %2429 = vsyncadd [#allocation5], 4294963200  ;;  %v1547_v0 = vld [vmem:[#allocation2 + $0x70] sm:$0xf]  ;;  %v2208_v1 = vld [vmem:[#allocation2 + $0x74] sm:$0xf0] }
   0xc   :  { %v1611_v2 = vld [vmem:[#allocation2 + $0xf0] sm:$0xf]  ;;  %v1548_v3 = vor.u32 %v2208_v1, %v1547_v0  ;;  %v2224_v4 = vld [vmem:[#allocation2 + $0xf4] sm:$0xf0]  ;;  %v1539_v11 = vld [vmem:[#allocation2 + $0x60] sm:$0xf] }
   0xd   :  { %v1675_v5 = vld [vmem:[#allocation2 + $0x170] sm:$0xf]  ;;  %v2240_v6 = vld [vmem:[#allocation2 + $0x174] sm:$0xf0]  ;;  %v1612_v7 = vor.u32 %v2224_v4, %v1611_v2  ;;  %v2206_v13 = vld [vmem:[#allocation2 + $0x64] sm:$0xf0] }
   0xe   :  { %v1676_v8 = vor.u32 %v2240_v6, %v1675_v5  ;;  %v1739_v9 = vld [vmem:[#allocation2 + $0x1f0] sm:$0xf]  ;;  %v2256_v10 = vld [vmem:[#allocation2 + $0x1f4] sm:$0xf0]  ;;  %848 = vmatpush.bf16.msra.mxu0 %v1548_v3  ;;  %v1603_v14 = vld [vmem:[#allocation2 + $0xe0] sm:$0xf]  ;;  %v1540_v16 = vor.u32 %v2206_v13, %v1539_v11 }
   0xf   :  { %v1740_v12 = vor.u32 %v2256_v10, %v1739_v9  ;;  %v2222_v15 = vld [vmem:[#allocation2 + $0xe4] sm:$0xf0]  ;;  %861 = vmatpush.bf16.msra.mxu1 %v1612_v7  ;;  %v1667_v18 = vld [vmem:[#allocation2 + $0x160] sm:$0xf]  ;;  %v1531_v23 = vld [vmem:[#allocation2 + $0x50] sm:$0xf] }
  0x10   :  { %874 = vmatpush.bf16.msra.mxu2 %v1676_v8  ;;  %v1604_v17 = vor.u32 %v2222_v15, %v1603_v14  ;;  %v2238_v19 = vld [vmem:[#allocation2 + $0x164] sm:$0xf0]  ;;  %v1731_v20 = vld [vmem:[#allocation2 + $0x1e0] sm:$0xf]  ;;  %v2204_v24 = vld [vmem:[#allocation2 + $0x54] sm:$0xf0] }
  0x11   :  { %887 = vmatpush.bf16.msra.mxu3 %v1740_v12  ;;  %v1668_v21 = vor.u32 %v2238_v19, %v1667_v18  ;;  %v2254_v22 = vld [vmem:[#allocation2 + $0x1e4] sm:$0xf0]  ;;  %v1595_v26 = vld [vmem:[#allocation2 + $0xd0] sm:$0xf]  ;;  %v2220_v27 = vld [vmem:[#allocation2 + $0xd4] sm:$0xf0]  ;;  %v1532_v29 = vor.u32 %v2204_v24, %v1531_v23 }
  0x12   :  { %v1732_v25 = vor.u32 %v2254_v22, %v1731_v20  ;;  %v1659_v28 = vld [vmem:[#allocation2 + $0x150] sm:$0xf]  ;;  %849 = vmatpush.bf16.msra.mxu0 %v1540_v16  ;;  %v2236_v30 = vld [vmem:[#allocation2 + $0x154] sm:$0xf0]  ;;  %v1596_v33 = vor.u32 %v2220_v27, %v1595_v26  ;;  %v1523_v35 = vld [vmem:[#allocation2 + $0x40] sm:$0xf] }
  0x13   :  { %v1723_v31 = vld [vmem:[#allocation2 + $0x1d0] sm:$0xf]  ;;  %v2252_v32 = vld [vmem:[#allocation2 + $0x1d4] sm:$0xf0]  ;;  %862 = vmatpush.bf16.msra.mxu1 %v1604_v17  ;;  %v1660_v34 = vor.u32 %v2236_v30, %v1659_v28  ;;  %v2202_v36 = vld [vmem:[#allocation2 + $0x44] sm:$0xf0] }
  0x14   :  { %875 = vmatpush.bf16.msra.mxu2 %v1668_v21  ;;  %v1587_v37 = vld [vmem:[#allocation2 + $0xc0] sm:$0xf]  ;;  %v1724_v38 = vor.u32 %v2252_v32, %v1723_v31  ;;  %v2218_v39 = vld [vmem:[#allocation2 + $0xc4] sm:$0xf0]  ;;  %v1524_v44 = vor.u32 %v2202_v36, %v1523_v35  ;;  %v1515_v47 = vld [vmem:[#allocation2 + $0x30] sm:$0xf] }
  0x15   :  { %888 = vmatpush.bf16.msra.mxu3 %v1732_v25  ;;  %v1651_v40 = vld [vmem:[#allocation2 + $0x140] sm:$0xf]  ;;  %v2234_v41 = vld [vmem:[#allocation2 + $0x144] sm:$0xf0]  ;;  %v1588_v45 = vor.u32 %v2218_v39, %v1587_v37  ;;  %v2200_v48 = vld [vmem:[#allocation2 + $0x34] sm:$0xf0] }
  0x16   :  { %v1715_v42 = vld [vmem:[#allocation2 + $0x1c0] sm:$0xf]  ;;  %v2250_v43 = vld [vmem:[#allocation2 + $0x1c4] sm:$0xf0]  ;;  %850 = vmatpush.bf16.msra.mxu0 %v1532_v29  ;;  %v1652_v46 = vor.u32 %v2234_v41, %v1651_v40  ;;  %v1579_v49 = vld [vmem:[#allocation2 + $0xb0] sm:$0xf]  ;;  %v1516_v56 = vor.u32 %v2200_v48, %v1515_v47 }
  0x17   :  { %863 = vmatpush.bf16.msra.mxu1 %v1596_v33  ;;  %v1716_v50 = vor.u32 %v2250_v43, %v1715_v42  ;;  %v2216_v51 = vld [vmem:[#allocation2 + $0xb4] sm:$0xf0]  ;;  %v1643_v52 = vld [vmem:[#allocation2 + $0x130] sm:$0xf]  ;;  %v1507_v59 = vld [vmem:[#allocation2 + $0x20] sm:$0xf] }
  0x18   :  { %876 = vmatpush.bf16.msra.mxu2 %v1660_v34  ;;  %v2232_v53 = vld [vmem:[#allocation2 + $0x134] sm:$0xf0]  ;;  %v1707_v54 = vld [vmem:[#allocation2 + $0x1b0] sm:$0xf]  ;;  %v1580_v57 = vor.u32 %v2216_v51, %v1579_v49  ;;  %v2198_v60 = vld [vmem:[#allocation2 + $0x24] sm:$0xf0] }
  0x19   :  { %889 = vmatpush.bf16.msra.mxu3 %v1724_v38  ;;  %v2248_v55 = vld [vmem:[#allocation2 + $0x1b4] sm:$0xf0]  ;;  %v1644_v58 = vor.u32 %v2232_v53, %v1643_v52  ;;  %v1571_v61 = vld [vmem:[#allocation2 + $0xa0] sm:$0xf]  ;;  %v2214_v63 = vld [vmem:[#allocation2 + $0xa4] sm:$0xf0]  ;;  %v1508_v4 = vor.u32 %v2198_v60, %v1507_v59 }
  0x1a   :  { %851 = vmatpush.bf16.msra.mxu0 %v1524_v44  ;;  %v1708_v62 = vor.u32 %v2248_v55, %v1707_v54  ;;  %v1635_v0 = vld [vmem:[#allocation2 + $0x120] sm:$0xf]  ;;  %v2230_v1 = vld [vmem:[#allocation2 + $0x124] sm:$0xf0]  ;;  %v1572_v5 = vor.u32 %v2214_v63, %v1571_v61  ;;  %v1499_v7 = vld [vmem:[#allocation2 + $0x10] sm:$0xf] }
  0x1b   :  { %864 = vmatpush.bf16.msra.mxu1 %v1588_v45  ;;  %v1699_v2 = vld [vmem:[#allocation2 + $0x1a0] sm:$0xf]  ;;  %v2246_v3 = vld [vmem:[#allocation2 + $0x1a4] sm:$0xf0]  ;;  %v1636_v6 = vor.u32 %v2230_v1, %v1635_v0  ;;  %v2196_v8 = vld [vmem:[#allocation2 + $0x14] sm:$0xf0] }
  0x1c   :  { %877 = vmatpush.bf16.msra.mxu2 %v1652_v46  ;;  %v1563_v9 = vld [vmem:[#allocation2 + $0x90] sm:$0xf]  ;;  %v1700_v10 = vor.u32 %v2246_v3, %v1699_v2  ;;  %v2212_v11 = vld [vmem:[#allocation2 + $0x94] sm:$0xf0]  ;;  %v1500_v16 = vor.u32 %v2196_v8, %v1499_v7  ;;  %v1491_v17 = vld [vmem:[#allocation2] sm:$0xf] }
  0x1d   :  { %890 = vmatpush.bf16.msra.mxu3 %v1716_v50  ;;  %v1627_v12 = vld [vmem:[#allocation2 + $0x110] sm:$0xf]  ;;  %v2228_v13 = vld [vmem:[#allocation2 + $0x114] sm:$0xf0]  ;;  %v2194_v18 = vld [vmem:[#allocation2 + $0x4] sm:$0xf0]  ;;  %v1564_v19 = vor.u32 %v2212_v11, %v1563_v9 }
  0x1e   :  { %852 = vmatpush.bf16.msra.mxu0 %v1516_v56  ;;  %v1691_v14 = vld [vmem:[#allocation2 + $0x190] sm:$0xf]  ;;  %v2244_v15 = vld [vmem:[#allocation2 + $0x194] sm:$0xf0]  ;;  %v1628_v20 = vor.u32 %v2228_v13, %v1627_v12  ;;  %v1555_v21 = vld [vmem:[#allocation2 + $0x80] sm:$0xf]  ;;  %v1492_v31 = vor.u32 %v2194_v18, %v1491_v17 }
  0x1f   :  { %865 = vmatpush.bf16.msra.mxu1 %v1580_v57  ;;  %v2210_v22 = vld [vmem:[#allocation2 + $0x84] sm:$0xf0]  ;;  %v1619_v23 = vld [vmem:[#allocation2 + $0x100] sm:$0xf]  ;;  %v1692_v24 = vor.u32 %v2244_v15, %v1691_v14  ;;  %v1803_v28 = vld [vmem:[#allocation2 + $0x270] sm:$0xf] }
  0x20   :  { %878 = vmatpush.bf16.msra.mxu2 %v1644_v58  ;;  %v2226_v25 = vld [vmem:[#allocation2 + $0x104] sm:$0xf0]  ;;  %v1683_v26 = vld [vmem:[#allocation2 + $0x180] sm:$0xf]  ;;  %v2272_v29 = vld [vmem:[#allocation2 + $0x274] sm:$0xf0]  ;;  %v1556_v35 = vor.u32 %v2210_v22, %v1555_v21 }
  0x21   :  { %891 = vmatpush.bf16.msra.mxu3 %v1708_v62  ;;  %v2242_v27 = vld [vmem:[#allocation2 + $0x184] sm:$0xf0]  ;;  %v1867_v30 = vld [vmem:[#allocation2 + $0x2f0] sm:$0xf]  ;;  %v2288_v32 = vld [vmem:[#allocation2 + $0x2f4] sm:$0xf0]  ;;  %v1620_v36 = vor.u32 %v2226_v25, %v1619_v23  ;;  %v1804_v40 = vor.u32 %v2272_v29, %v1803_v28 }
  0x22   :  { %853 = vmatpush.bf16.msra.mxu0 %v1508_v4  ;;  %v1931_v33 = vld [vmem:[#allocation2 + $0x370] sm:$0xf]  ;;  %v2304_v34 = vld [vmem:[#allocation2 + $0x374] sm:$0xf0]  ;;  %v1684_v39 = vor.u32 %v2242_v27, %v1683_v26  ;;  %v1868_v41 = vor.u32 %v2288_v32, %v1867_v30  ;;  %v1795_v43 = vld [vmem:[#allocation2 + $0x260] sm:$0xf] }
  0x23   :  { %866 = vmatpush.bf16.msra.mxu1 %v1572_v5  ;;  %v1995_v37 = vld [vmem:[#allocation2 + $0x3f0] sm:$0xf]  ;;  %v2320_v38 = vld [vmem:[#allocation2 + $0x3f4] sm:$0xf0]  ;;  %v1932_v42 = vor.u32 %v2304_v34, %v1931_v33  ;;  %v2270_v44 = vld [vmem:[#allocation2 + $0x264] sm:$0xf0] }
  0x24   :  { %879 = vmatpush.bf16.msra.mxu2 %v1636_v6  ;;  %v1859_v45 = vld [vmem:[#allocation2 + $0x2e0] sm:$0xf]  ;;  %v1996_v46 = vor.u32 %v2320_v38, %v1995_v37  ;;  %v2286_v47 = vld [vmem:[#allocation2 + $0x2e4] sm:$0xf0]  ;;  %v60_v52 = vld [vmem:[%s2600_s0 + $0x10] sm:$0xff]  ;;  %v1796_v53 = vor.u32 %v2270_v44, %v1795_v43 }
  0x25   :  { %892 = vmatpush.bf16.msra.mxu3 %v1700_v10  ;;  %v1923_v48 = vld [vmem:[#allocation2 + $0x360] sm:$0xf]  ;;  %v2302_v49 = vld [vmem:[#allocation2 + $0x364] sm:$0xf0]  ;;  %v1787_v54 = vld [vmem:[#allocation2 + $0x250] sm:$0xf]  ;;  %v2483_v57 = vpack.c.bf16 %v60_v52, %v60_v52  ;;  %v1860_v58 = vor.u32 %v2286_v47, %v1859_v45 }
  0x26   :  { %854 = vmatpush.bf16.msra.mxu0 %v1500_v16  ;;  %v1987_v50 = vld [vmem:[#allocation2 + $0x3e0] sm:$0xf]  ;;  %v2318_v51 = vld [vmem:[#allocation2 + $0x3e4] sm:$0xf0]  ;;  %v2268_v55 = vld [vmem:[#allocation2 + $0x254] sm:$0xf0]  ;;  %v1924_v59 = vor.u32 %v2302_v49, %v1923_v48 }
  0x27   :  { %867 = vmatpush.bf16.msra.mxu1 %v1564_v19  ;;  %v1851_v56 = vld [vmem:[#allocation2 + $0x2d0] sm:$0xf]  ;;  %v2284_v60 = vld [vmem:[#allocation2 + $0x2d4] sm:$0xf0]  ;;  %v1988_v63 = vor.u32 %v2318_v51, %v1987_v50  ;;  %v58_v0 = vld [vmem:[%s2600_s0] sm:$0xff]  ;;  %v1788_v8 = vor.u32 %v2268_v55, %v1787_v54 }
  0x28   :  { %880 = vmatpush.bf16.msra.mxu2 %v1628_v20  ;;  %v1915_v61 = vld [vmem:[#allocation2 + $0x350] sm:$0xf]  ;;  %v2300_v62 = vld [vmem:[#allocation2 + $0x354] sm:$0xf0]  ;;  %v59_v2 = vld [vmem:[%s2600_s0 + $0x8] sm:$0xff]  ;;  %v2495_v5 = vpack.c.bf16 %v58_v0, %v58_v0  ;;  %v1852_v9 = vor.u32 %v2284_v60, %v1851_v56 }
  0x29   :  { %893 = vmatpush.bf16.msra.mxu3 %v1692_v24  ;;  %v61_v1 = vld [vmem:[%s2600_s0 + $0x18] sm:$0xff]  ;;  %v1979_v3 = vld [vmem:[#allocation2 + $0x3d0] sm:$0xf]  ;;  %v2499_v7 = vpack.c.bf16 %v59_v2, %v59_v2  ;;  %v1916_v10 = vor.u32 %v2300_v62, %v1915_v61  ;;  %v1779_v11 = vld [vmem:[#allocation2 + $0x240] sm:$0xf] }
  0x2a   :  { %855 = vmatpush.bf16.msra.mxu0 %v1492_v31  ;;  %v2316_v4 = vld [vmem:[#allocation2 + $0x3d4] sm:$0xf0]  ;;  %v2497_v6 = vpack.c.bf16 %v61_v1, %v61_v1  ;;  %v2266_v12 = vld [vmem:[#allocation2 + $0x244] sm:$0xf0]  ;;  %v1843_v13 = vld [vmem:[#allocation2 + $0x2c0] sm:$0xf] }
  0x2b   :  { %868 = vmatpush.bf16.msra.mxu1 %v1556_v35  ;;  %v1980_v14 = vor.u32 %v2316_v4, %v1979_v3  ;;  %v2282_v15 = vld [vmem:[#allocation2 + $0x2c4] sm:$0xf0]  ;;  %v1907_v16 = vld [vmem:[#allocation2 + $0x340] sm:$0xf]  ;;  %v1780_v20 = vor.u32 %v2266_v12, %v1779_v11  ;;  %v1771_v23 = vld [vmem:[#allocation2 + $0x230] sm:$0xf] }
  0x2c   :  { %881 = vmatpush.bf16.msra.mxu2 %v1620_v36  ;;  %v2298_v17 = vld [vmem:[#allocation2 + $0x344] sm:$0xf0]  ;;  %v1971_v18 = vld [vmem:[#allocation2 + $0x3c0] sm:$0xf]  ;;  %v1844_v21 = vor.u32 %v2282_v15, %v1843_v13  ;;  %v2264_v24 = vld [vmem:[#allocation2 + $0x234] sm:$0xf0] }
  0x2d   :  { %894 = vmatpush.bf16.msra.mxu3 %v1684_v39  ;;  %856 = vmatmul.bf16.vlgmr.msra.gmra.mxu0 %v2495_v5  ;;  %v2314_v19 = vld [vmem:[#allocation2 + $0x3c4] sm:$0xf0]  ;;  %v1908_v22 = vor.u32 %v2298_v17, %v1907_v16  ;;  %v1835_v25 = vld [vmem:[#allocation2 + $0x2b0] sm:$0xf]  ;;  %v2280_v27 = vld [vmem:[#allocation2 + $0x2b4] sm:$0xf0]  ;;  %v1772_v32 = vor.u32 %v2264_v24, %v1771_v23 }
  0x2e   :  { %900 = vmatpush.bf16.msrb.mxu0 %v1804_v40  ;;  %869 = vmatmul.bf16.vlgmr.msra.gmra.mxu1 %v2499_v7  ;;  %v1972_v26 = vor.u32 %v2314_v19, %v1971_v18  ;;  %v1899_v28 = vld [vmem:[#allocation2 + $0x330] sm:$0xf]  ;;  %v2296_v29 = vld [vmem:[#allocation2 + $0x334] sm:$0xf0]  ;;  %v1836_v33 = vor.u32 %v2280_v27, %v1835_v25  ;;  %v1763_v35 = vld [vmem:[#allocation2 + $0x220] sm:$0xf] }
  0x2f   :  { %913 = vmatpush.bf16.msrb.mxu1 %v1868_v41  ;;  %882 = vmatmul.bf16.vlgmr.msra.gmra.mxu2 %v2483_v57  ;;  %v1963_v30 = vld [vmem:[#allocation2 + $0x3b0] sm:$0xf]  ;;  %v2312_v31 = vld [vmem:[#allocation2 + $0x3b4] sm:$0xf0]  ;;  %v1900_v34 = vor.u32 %v2296_v29, %v1899_v28  ;;  %v2262_v36 = vld [vmem:[#allocation2 + $0x224] sm:$0xf0] }
  0x30   :  { %926 = vmatpush.bf16.msrb.mxu2 %v1932_v42  ;;  %895 = vmatmul.bf16.vlgmr.msra.gmra.mxu3 %v2497_v6  ;;  %v1827_v37 = vld [vmem:[#allocation2 + $0x2a0] sm:$0xf]  ;;  %v1964_v38 = vor.u32 %v2312_v31, %v1963_v30  ;;  %v2278_v39 = vld [vmem:[#allocation2 + $0x2a4] sm:$0xf0]  ;;  %v1764_v44 = vor.u32 %v2262_v36, %v1763_v35  ;;  %v1755_v47 = vld [vmem:[#allocation2 + $0x210] sm:$0xf] }
  0x31   :  { %939 = vmatpush.bf16.msrb.mxu3 %v1996_v46  ;;  %v1891_v40 = vld [vmem:[#allocation2 + $0x320] sm:$0xf]  ;;  %v2294_v41 = vld [vmem:[#allocation2 + $0x324] sm:$0xf0]  ;;  %v1828_v45 = vor.u32 %v2278_v39, %v1827_v37  ;;  %v2260_v48 = vld [vmem:[#allocation2 + $0x214] sm:$0xf0] }
  0x32   :  { %901 = vmatpush.bf16.msrb.mxu0 %v1796_v53  ;;  %v1955_v42 = vld [vmem:[#allocation2 + $0x3a0] sm:$0xf]  ;;  %v2310_v43 = vld [vmem:[#allocation2 + $0x3a4] sm:$0xf0]  ;;  %v1892_v46 = vor.u32 %v2294_v41, %v1891_v40  ;;  %v1819_v49 = vld [vmem:[#allocation2 + $0x290] sm:$0xf]  ;;  %v1756_v56 = vor.u32 %v2260_v48, %v1755_v47 }
  0x33   :  { %914 = vmatpush.bf16.msrb.mxu1 %v1860_v58  ;;  %v1956_v50 = vor.u32 %v2310_v43, %v1955_v42  ;;  %v2276_v51 = vld [vmem:[#allocation2 + $0x294] sm:$0xf0]  ;;  %v1883_v52 = vld [vmem:[#allocation2 + $0x310] sm:$0xf]  ;;  %v1747_v58 = vld [vmem:[#allocation2 + $0x200] sm:$0xf] }
  0x34   :  { %927 = vmatpush.bf16.msrb.mxu2 %v1924_v59  ;;  %v2292_v53 = vld [vmem:[#allocation2 + $0x314] sm:$0xf0]  ;;  %v1947_v54 = vld [vmem:[#allocation2 + $0x390] sm:$0xf]  ;;  %v2258_v59 = vld [vmem:[#allocation2 + $0x204] sm:$0xf0]  ;;  %v1820_v60 = vor.u32 %v2276_v51, %v1819_v49 }
  0x35   :  { %940 = vmatpush.bf16.msrb.mxu3 %v1988_v63  ;;  %v2308_v55 = vld [vmem:[#allocation2 + $0x394] sm:$0xf0]  ;;  %v1884_v61 = vor.u32 %v2292_v53, %v1883_v52  ;;  %v1811_v62 = vld [vmem:[#allocation2 + $0x280] sm:$0xf]  ;;  %v2274_v63 = vld [vmem:[#allocation2 + $0x284] sm:$0xf0]  ;;  %v1748_v11 = vor.u32 %v2258_v59, %v1747_v58 }
  0x36   :  { %902 = vmatpush.bf16.msrb.mxu0 %v1788_v8  ;;  %v1875_v0 = vld [vmem:[#allocation2 + $0x300] sm:$0xf]  ;;  %v1948_v1 = vor.u32 %v2308_v55, %v1947_v54  ;;  %v2290_v2 = vld [vmem:[#allocation2 + $0x304] sm:$0xf0]  ;;  %v2207_v8 = vld [vmem:[#allocation2 + $0x74] sm:$0xf]  ;;  %v1812_v15 = vor.u32 %v2274_v63, %v1811_v62 }
  0x37   :  { %915 = vmatpush.bf16.msrb.mxu1 %v1852_v9  ;;  %v1939_v3 = vld [vmem:[#allocation2 + $0x380] sm:$0xf]  ;;  %v2306_v4 = vld [vmem:[#allocation2 + $0x384] sm:$0xf0]  ;;  %v1549_v9 = vld [vmem:[#allocation2 + $0x78] sm:$0xf0]  ;;  %v1876_v16 = vor.u32 %v2290_v2, %v1875_v0 }
  0x38   :  { %928 = vmatpush.bf16.msrb.mxu2 %v1916_v10  ;;  %v2223_v10 = vld [vmem:[#allocation2 + $0xf4] sm:$0xf]  ;;  %v1613_v12 = vld [vmem:[#allocation2 + $0xf8] sm:$0xf0]  ;;  %v2205_v24 = vld [vmem:[#allocation2 + $0x64] sm:$0xf] }
  0x39   :  { %941 = vmatpush.bf16.msrb.mxu3 %v1980_v14  ;;  %v2239_v13 = vld [vmem:[#allocation2 + $0x174] sm:$0xf]  ;;  %v1677_v14 = vld [vmem:[#allocation2 + $0x178] sm:$0xf0]  ;;  %v1616_v25 = vor.u32 %v2223_v10, %v1613_v12  ;;  %v1541_v27 = vld [vmem:[#allocation2 + $0x68] sm:$0xf0] }
  0x3a   :  { %903 = vmatpush.bf16.msrb.mxu0 %v1780_v20  ;;  %v2255_v17 = vld [vmem:[#allocation2 + $0x1f4] sm:$0xf]  ;;  %v1741_v18 = vld [vmem:[#allocation2 + $0x1f8] sm:$0xf0]  ;;  %v1940_v20 = vor.u32 %v2306_v4, %v1939_v3  ;;  %v2221_v28 = vld [vmem:[#allocation2 + $0xe4] sm:$0xf]  ;;  %v1544_v39 = vor.u32 %v2205_v24, %v1541_v27 }
  0x3b   :  { %916 = vmatpush.bf16.msrb.mxu1 %v1844_v21  ;;  %v64_v19 = vld [vmem:[%s2600_s0 + $0x30] sm:$0xff]  ;;  %v1552_v21 = vor.u32 %v2207_v8, %v1549_v9  ;;  %v65_v23 = vld [vmem:[%s2600_s0 + $0x38] sm:$0xff]  ;;  %v63_v29 = vld [vmem:[%s2600_s0 + $0x28] sm:$0xff]  ;;  %v1744_v30 = vor.u32 %v2255_v17, %v1741_v18 }
  0x3c   :  { %929 = vmatpush.bf16.msrb.mxu2 %v1908_v22  ;;  %v62_v22 = vld [vmem:[%s2600_s0 + $0x20] sm:$0xff]  ;;  %v2516_v31 = vpack.c.bf16 %v64_v19, %v64_v19  ;;  %v2520_v36 = vpack.c.bf16 %v65_v23, %v65_v23  ;;  %v2522_v40 = vpack.c.bf16 %v63_v29, %v63_v29  ;;  %v2203_v43 = vld [vmem:[#allocation2 + $0x54] sm:$0xf]  ;;  %v1597_v47 = vld [vmem:[#allocation2 + $0xd8] sm:$0xf0] }
  0x3d   :  { %942 = vmatpush.bf16.msrb.mxu3 %v1972_v26  ;;  %v1680_v26 = vor.u32 %v2239_v13, %v1677_v14  ;;  %v2518_v35 = vpack.c.bf16 %v62_v22, %v62_v22  ;;  %v2253_v37 = vld [vmem:[#allocation2 + $0x1e4] sm:$0xf]  ;;  %v2235_v48 = vld [vmem:[#allocation2 + $0x154] sm:$0xf]  ;;  %v1661_v49 = vld [vmem:[#allocation2 + $0x158] sm:$0xf0] }
  0x3e   :  { %904 = vmatpush.bf16.msrb.mxu0 %v1772_v32  ;;  %v1605_v32 = vld [vmem:[#allocation2 + $0xe8] sm:$0xf0]  ;;  %v1725_v51 = vld [vmem:[#allocation2 + $0x1d8] sm:$0xf0]  ;;  %v1664_v54 = vor.u32 %v2235_v48, %v1661_v49  ;;  %v2201_v55 = vld [vmem:[#allocation2 + $0x44] sm:$0xf] }
  0x3f   :  { %917 = vmatpush.bf16.msrb.mxu1 %v1836_v33  ;;  %v2237_v33 = vld [vmem:[#allocation2 + $0x164] sm:$0xf]  ;;  %v1608_v41 = vor.u32 %v2221_v28, %v1605_v32  ;;  %v1653_v62 = vld [vmem:[#allocation2 + $0x148] sm:$0xf0]  ;;  %v2199_v4 = vld [vmem:[#allocation2 + $0x34] sm:$0xf] }
  0x40   :  { %930 = vmatpush.bf16.msrb.mxu2 %v1900_v34  ;;  %v1669_v34 = vld [vmem:[#allocation2 + $0x168] sm:$0xf0]  ;;  %v2217_v58 = vld [vmem:[#allocation2 + $0xc4] sm:$0xf]  ;;  %v1517_v8 = vld [vmem:[#allocation2 + $0x38] sm:$0xf0] }
  0x41   :  { %943 = vmatpush.bf16.msrb.mxu3 %v1964_v38  ;;  %v1733_v38 = vld [vmem:[#allocation2 + $0x1e8] sm:$0xf0]  ;;  %v1672_v42 = vor.u32 %v2237_v33, %v1669_v34  ;;  %v2249_v63 = vld [vmem:[#allocation2 + $0x1c4] sm:$0xf]  ;;  %v2215_v9 = vld [vmem:[#allocation2 + $0xb4] sm:$0xf] }
  0x42   :  { %905 = vmatpush.bf16.msrb.mxu0 %v1764_v44  ;;  %v1533_v44 = vld [vmem:[#allocation2 + $0x58] sm:$0xf0]  ;;  %v1717_v0 = vld [vmem:[#allocation2 + $0x1c8] sm:$0xf0]  ;;  %v2231_v12 = vld [vmem:[#allocation2 + $0x134] sm:$0xf] }
  0x43   :  { %918 = vmatpush.bf16.msrb.mxu1 %v1828_v45  ;;  %v2219_v45 = vld [vmem:[#allocation2 + $0xd4] sm:$0xf]  ;;  %v1536_v52 = vor.u32 %v2203_v43, %v1533_v44  ;;  %v1720_v10 = vor.u32 %v2249_v63, %v1717_v0  ;;  %v1645_v13 = vld [vmem:[#allocation2 + $0x138] sm:$0xf0]  ;;  %v2197_v19 = vld [vmem:[#allocation2 + $0x24] sm:$0xf] }
  0x44   :  { %931 = vmatpush.bf16.msrb.mxu2 %v1892_v46  ;;  %v1736_v46 = vor.u32 %v2253_v37, %v1733_v38  ;;  %v1600_v53 = vor.u32 %v2219_v45, %v1597_v47  ;;  %v2247_v14 = vld [vmem:[#allocation2 + $0x1b4] sm:$0xf]  ;;  %v1648_v18 = vor.u32 %v2231_v12, %v1645_v13  ;;  %v1573_v23 = vld [vmem:[#allocation2 + $0xa8] sm:$0xf0]  ;;  %v2229_v24 = vld [vmem:[#allocation2 + $0x124] sm:$0xf] }
  0x45   :  { %944 = vmatpush.bf16.msrb.mxu3 %v1956_v50  ;;  %v2251_v50 = vld [vmem:[#allocation2 + $0x1d4] sm:$0xf]  ;;  %v1701_v27 = vld [vmem:[#allocation2 + $0x1a8] sm:$0xf0]  ;;  %v1501_v33 = vld [vmem:[#allocation2 + $0x18] sm:$0xf0] }
  0x46   :  { %906 = vmatpush.bf16.msrb.mxu0 %v1756_v56  ;;  %v1525_v56 = vld [vmem:[#allocation2 + $0x48] sm:$0xf0]  ;;  %v1728_v59 = vor.u32 %v2251_v50, %v1725_v51  ;;  %v2195_v32 = vld [vmem:[#allocation2 + $0x14] sm:$0xf]  ;;  %v1565_v38 = vld [vmem:[#allocation2 + $0x98] sm:$0xf0] }
  0x47   :  { %919 = vmatpush.bf16.msrb.mxu1 %v1820_v60  ;;  %v1589_v60 = vld [vmem:[#allocation2 + $0xc8] sm:$0xf0]  ;;  %v2211_v34 = vld [vmem:[#allocation2 + $0x94] sm:$0xf]  ;;  %v1693_v43 = vld [vmem:[#allocation2 + $0x198] sm:$0xf0]  ;;  %v1504_v44 = vor.u32 %v2195_v32, %v1501_v33 }
  0x48   :  { %932 = vmatpush.bf16.msrb.mxu2 %v1884_v61  ;;  %v2233_v61 = vld [vmem:[#allocation2 + $0x144] sm:$0xf]  ;;  %v1592_v2 = vor.u32 %v2217_v58, %v1589_v60  ;;  %v1568_v47 = vor.u32 %v2211_v34, %v1565_v38  ;;  %v1557_v50 = vld [vmem:[#allocation2 + $0x88] sm:$0xf0]  ;;  %v1805_v58 = vld [vmem:[#allocation2 + $0x278] sm:$0xf0] }
  0x49   :  { %945 = vmatpush.bf16.msrb.mxu3 %v1948_v1  ;;  %v1528_v1 = vor.u32 %v2201_v55, %v1525_v56  ;;  %v1656_v3 = vor.u32 %v2233_v61, %v1653_v62  ;;  %v2193_v45 = vld [vmem:[#allocation2 + $0x4] sm:$0xf]  ;;  %v1685_v55 = vld [vmem:[#allocation2 + $0x188] sm:$0xf0]  ;;  %v2271_v56 = vld [vmem:[#allocation2 + $0x274] sm:$0xf] }
  0x4a   :  { %907 = vmatpush.bf16.msrb.mxu0 %v1748_v11  ;;  %v1581_v11 = vld [vmem:[#allocation2 + $0xb8] sm:$0xf0]  ;;  %v2209_v49 = vld [vmem:[#allocation2 + $0x84] sm:$0xf]  ;;  %v2303_v62 = vld [vmem:[#allocation2 + $0x374] sm:$0xf] }
  0x4b   :  { %920 = vmatpush.bf16.msrb.mxu1 %v1812_v15  ;;  %v1709_v15 = vld [vmem:[#allocation2 + $0x1b8] sm:$0xf0]  ;;  %v1584_v17 = vor.u32 %v2215_v9, %v1581_v11  ;;  %v2225_v51 = vld [vmem:[#allocation2 + $0x104] sm:$0xf]  ;;  %v1560_v0 = vor.u32 %v2209_v49, %v1557_v50  ;;  %v1797_v12 = vld [vmem:[#allocation2 + $0x268] sm:$0xf0] }
  0x4c   :  { %933 = vmatpush.bf16.msrb.mxu2 %v1876_v16  ;;  %v1520_v16 = vor.u32 %v2199_v4, %v1517_v8  ;;  %v1712_v22 = vor.u32 %v2247_v14, %v1709_v15  ;;  %v1869_v61 = vld [vmem:[#allocation2 + $0x2f8] sm:$0xf0]  ;;  %v1808_v8 = vor.u32 %v2271_v56, %v1805_v58  ;;  %v2269_v11 = vld [vmem:[#allocation2 + $0x264] sm:$0xf]  ;;  %v1861_v15 = vld [vmem:[#allocation2 + $0x2e8] sm:$0xf0] }
  0x4d   :  { %946 = vmatpush.bf16.msrb.mxu3 %v1940_v20  ;;  %908 = vmatmul.bf16.vlgmr.msrb.gmra.mxu0 %v2518_v35  ;;  %v1509_v20 = vld [vmem:[#allocation2 + $0x28] sm:$0xf0]  ;;  %v1933_v63 = vld [vmem:[#allocation2 + $0x378] sm:$0xf0]  ;;  %v2285_v13 = vld [vmem:[#allocation2 + $0x2e4] sm:$0xf] }
  0x4e   :  { %952 = vmatpush.bf16.msra.mxu0 %v1552_v21  ;;  %921 = vmatmul.bf16.vlgmr.msrb.gmra.mxu1 %v2522_v40  ;;  %v2213_v21 = vld [vmem:[#allocation2 + $0xa4] sm:$0xf]  ;;  %v1512_v28 = vor.u32 %v2197_v19, %v1509_v20  ;;  %v1989_v19 = vld [vmem:[#allocation2 + $0x3e8] sm:$0xf0]  ;;  %v1800_v20 = vor.u32 %v2269_v11, %v1797_v12  ;;  %v1981_v32 = vld [vmem:[#allocation2 + $0x3d8] sm:$0xf0] }
  0x4f   :  { %965 = vmatpush.bf16.msra.mxu1 %v1616_v25  ;;  %934 = vmatmul.bf16.vlgmr.msrb.gmra.mxu2 %v2516_v31  ;;  %v1637_v25 = vld [vmem:[#allocation2 + $0x128] sm:$0xf0]  ;;  %v1576_v29 = vor.u32 %v2213_v21, %v1573_v23  ;;  %v1864_v21 = vor.u32 %v2285_v13, %v1861_v15  ;;  %v2267_v23 = vld [vmem:[#allocation2 + $0x254] sm:$0xf]  ;;  %v2265_v38 = vld [vmem:[#allocation2 + $0x244] sm:$0xf] }
  0x50   :  { %978 = vmatpush.bf16.msra.mxu2 %v1680_v26  ;;  %947 = vmatmul.bf16.vlgmr.msrb.gmra.mxu3 %v2520_v36  ;;  %v2245_v26 = vld [vmem:[#allocation2 + $0x1a4] sm:$0xf]  ;;  %v2279_v49 = vld [vmem:[#allocation2 + $0x2b4] sm:$0xf]  ;;  %v1757_v12 = vld [vmem:[#allocation2 + $0x218] sm:$0xf0] }
  0x51   :  { %991 = vmatpush.bf16.msra.mxu3 %v1744_v30  ;;  %v1640_v30 = vor.u32 %v2229_v24, %v1637_v25  ;;  %v1704_v37 = vor.u32 %v2245_v26, %v1701_v27  ;;  %v1789_v24 = vld [vmem:[#allocation2 + $0x258] sm:$0xf0]  ;;  %v2283_v25 = vld [vmem:[#allocation2 + $0x2d4] sm:$0xf] }
  0x52   :  { %953 = vmatpush.bf16.msra.mxu0 %v1544_v39  ;;  %v2227_v39 = vld [vmem:[#allocation2 + $0x114] sm:$0xf]  ;;  %v1853_v27 = vld [vmem:[#allocation2 + $0x2d8] sm:$0xf0]  ;;  %v1792_v33 = vor.u32 %v2267_v23, %v1789_v24  ;;  %v1749_v24 = vld [vmem:[#allocation2 + $0x208] sm:$0xf0] }
  0x53   :  { %966 = vmatpush.bf16.msra.mxu1 %v1608_v41  ;;  %v1629_v41 = vld [vmem:[#allocation2 + $0x118] sm:$0xf0]  ;;  %v1856_v34 = vor.u32 %v2283_v25, %v1853_v27  ;;  %v2259_v11 = vld [vmem:[#allocation2 + $0x214] sm:$0xf]  ;;  %v2273_v25 = vld [vmem:[#allocation2 + $0x284] sm:$0xf] }
  0x54   :  { %979 = vmatpush.bf16.msra.mxu2 %v1672_v42  ;;  %v2243_v42 = vld [vmem:[#allocation2 + $0x194] sm:$0xf]  ;;  %v1632_v48 = vor.u32 %v2227_v39, %v1629_v41  ;;  %v1781_v39 = vld [vmem:[#allocation2 + $0x248] sm:$0xf0]  ;;  %v1821_v15 = vld [vmem:[#allocation2 + $0x298] sm:$0xf0] }
  0x55   :  { %992 = vmatpush.bf16.msra.mxu3 %v1736_v46  ;;  %v1493_v46 = vld [vmem:[#allocation2 + $0x8] sm:$0xf0]  ;;  %v2275_v13 = vld [vmem:[#allocation2 + $0x294] sm:$0xf] }
  0x56   :  { %954 = vmatpush.bf16.msra.mxu0 %v1536_v52  ;;  %v1696_v52 = vor.u32 %v2243_v42, %v1693_v43  ;;  %v1496_v60 = vor.u32 %v2193_v45, %v1493_v46  ;;  %v1845_v42 = vld [vmem:[#allocation2 + $0x2c8] sm:$0xf0]  ;;  %v2297_v43 = vld [vmem:[#allocation2 + $0x344] sm:$0xf] }
  0x57   :  { %967 = vmatpush.bf16.msra.mxu1 %v1600_v53  ;;  %v1621_v53 = vld [vmem:[#allocation2 + $0x108] sm:$0xf0]  ;;  %v2313_v45 = vld [vmem:[#allocation2 + $0x3c4] sm:$0xf] }
  0x58   :  { %980 = vmatpush.bf16.msra.mxu2 %v1664_v54  ;;  %v2241_v54 = vld [vmem:[#allocation2 + $0x184] sm:$0xf] }
  0x59   :  { %993 = vmatpush.bf16.msra.mxu3 %v1728_v59  ;;  %v2287_v59 = vld [vmem:[#allocation2 + $0x2f4] sm:$0xf]  ;;  %v1688_v4 = vor.u32 %v2241_v54, %v1685_v55  ;;  %v1965_v55 = vld [vmem:[#allocation2 + $0x3b8] sm:$0xf0] }
  0x5a   :  { %955 = vmatpush.bf16.msra.mxu0 %v1528_v1  ;;  %v1624_v1 = vor.u32 %v2225_v51, %v1621_v53  ;;  %v1872_v9 = vor.u32 %v2287_v59, %v1869_v61  ;;  %v1837_v51 = vld [vmem:[#allocation2 + $0x2b8] sm:$0xf0]  ;;  %v2311_v54 = vld [vmem:[#allocation2 + $0x3b4] sm:$0xf]  ;;  %v1765_v61 = vld [vmem:[#allocation2 + $0x228] sm:$0xf0] }
  0x5b   :  { %968 = vmatpush.bf16.msra.mxu1 %v1592_v2  ;;  %v2319_v2 = vld [vmem:[#allocation2 + $0x3f4] sm:$0xf]  ;;  %v1901_v53 = vld [vmem:[#allocation2 + $0x338] sm:$0xf0]  ;;  %v1840_v58 = vor.u32 %v2279_v49, %v1837_v51  ;;  %v2332_v49 = vld [vmem:[#allocation4 + $0x54] sm:$0xf0] }
  0x5c   :  { %981 = vmatpush.bf16.msra.mxu2 %v1656_v3  ;;  %v1997_v3 = vld [vmem:[#allocation2 + $0x3f8] sm:$0xf0] }
  0x5d   :  { %994 = vmatpush.bf16.msra.mxu3 %v1720_v10  ;;  %v1936_v10 = vor.u32 %v2303_v62, %v1933_v63  ;;  %v2000_v14 = vor.u32 %v2319_v2, %v1997_v3  ;;  %v2277_v62 = vld [vmem:[#allocation2 + $0x2a4] sm:$0xf]  ;;  %v1968_v63 = vor.u32 %v2311_v54, %v1965_v55  ;;  %v1893_v2 = vld [vmem:[#allocation2 + $0x328] sm:$0xf0] }
  0x5e   :  { %956 = vmatpush.bf16.msra.mxu0 %v1520_v16  ;;  %v2301_v16 = vld [vmem:[#allocation2 + $0x364] sm:$0xf] }
  0x5f   :  { %969 = vmatpush.bf16.msra.mxu1 %v1584_v17  ;;  %v1925_v17 = vld [vmem:[#allocation2 + $0x368] sm:$0xf0]  ;;  %v2309_v3 = vld [vmem:[#allocation2 + $0x3a4] sm:$0xf] }
  0x60   :  { %982 = vmatpush.bf16.msra.mxu2 %v1648_v18  ;;  %v2317_v18 = vld [vmem:[#allocation2 + $0x3e4] sm:$0xf] }
  0x61   :  { %995 = vmatpush.bf16.msra.mxu3 %v1712_v22  ;;  %v1928_v22 = vor.u32 %v2301_v16, %v1925_v17  ;;  %v1992_v26 = vor.u32 %v2317_v18, %v1989_v19  ;;  %v2291_v16 = vld [vmem:[#allocation2 + $0x314] sm:$0xf]  ;;  %v1885_v17 = vld [vmem:[#allocation2 + $0x318] sm:$0xf0]  ;;  %v2329_v54 = vld [vmem:[#allocation4 + $0x44] sm:$0xf] }
  0x62   :  { %957 = vmatpush.bf16.msra.mxu0 %v1512_v28  ;;  %v2299_v28 = vld [vmem:[#allocation2 + $0x354] sm:$0xf]  ;;  %v1949_v19 = vld [vmem:[#allocation2 + $0x398] sm:$0xf0]  ;;  %v1888_v23 = vor.u32 %v2291_v16, %v1885_v17  ;;  %v2539_v17 = vld [vmem:[%s2602_s2] sm:$0x3] }
  0x63   :  { %970 = vmatpush.bf16.msra.mxu1 %v1576_v29  ;;  %v1917_v29 = vld [vmem:[#allocation2 + $0x358] sm:$0xf0]  ;;  %v2307_v18 = vld [vmem:[#allocation2 + $0x394] sm:$0xf] }
  0x64   :  { %983 = vmatpush.bf16.msra.mxu2 %v1640_v30  ;;  %v2315_v30 = vld [vmem:[#allocation2 + $0x3d4] sm:$0xf]  ;;  %v1952_v27 = vor.u32 %v2307_v18, %v1949_v19  ;;  %v2003_v18 = vld [vmem:[#allocation4] sm:$0xf]  ;;  %v2322_v19 = vld [vmem:[#allocation4 + $0x4] sm:$0xf0] }
  0x65   :  { %996 = vmatpush.bf16.msra.mxu3 %v1704_v37  ;;  %v1920_v37 = vor.u32 %v2299_v28, %v1917_v29  ;;  %v1984_v41 = vor.u32 %v2315_v30, %v1981_v32  ;;  %v2289_v28 = vld [vmem:[#allocation2 + $0x304] sm:$0xf]  ;;  %v1877_v29 = vld [vmem:[#allocation2 + $0x308] sm:$0xf0] }
  0x66   :  { %958 = vmatpush.bf16.msra.mxu0 %v1504_v44  ;;  %v1909_v44 = vld [vmem:[#allocation2 + $0x348] sm:$0xf0]  ;;  %v2305_v30 = vld [vmem:[#allocation2 + $0x384] sm:$0xf] }
  0x67   :  { %971 = vmatpush.bf16.msra.mxu1 %v1568_v47  ;;  %v2263_v47 = vld [vmem:[#allocation2 + $0x234] sm:$0xf]  ;;  %v1941_v32 = vld [vmem:[#allocation2 + $0x388] sm:$0xf0] }
  0x68   :  { %984 = vmatpush.bf16.msra.mxu2 %v1632_v48  ;;  %v1773_v48 = vld [vmem:[#allocation2 + $0x238] sm:$0xf0] }
  0x69   :  { %997 = vmatpush.bf16.msra.mxu3 %v1696_v52  ;;  %v2295_v52 = vld [vmem:[#allocation2 + $0x334] sm:$0xf]  ;;  %v1776_v56 = vor.u32 %v2263_v47, %v1773_v48  ;;  %v2043_v48 = vld [vmem:[#allocation4 + $0x50] sm:$0xf] }
  0x6a   :  { %959 = vmatpush.bf16.msra.mxu0 %v1496_v60  ;;  %v1904_v59 = vor.u32 %v2295_v52, %v1901_v53  ;;  %v2261_v60 = vld [vmem:[#allocation2 + $0x224] sm:$0xf]  ;;  %v2044_v51 = vor.u32 %v2332_v49, %v2043_v48  ;;  %v2035_v52 = vld [vmem:[#allocation4 + $0x40] sm:$0xf]  ;;  %v2330_v53 = vld [vmem:[#allocation4 + $0x44] sm:$0xf0] }
  0x6b   :  { %972 = vmatpush.bf16.msra.mxu1 %v1560_v0  ;;  %v1829_v0 = vld [vmem:[#allocation2 + $0x2a8] sm:$0xf0] }
  0x6c   :  { %985 = vmatpush.bf16.msra.mxu2 %v1624_v1  ;;  %v2293_v1 = vld [vmem:[#allocation2 + $0x324] sm:$0xf] }
  0x6d   :  { %998 = vmatpush.bf16.msra.mxu3 %v1688_v4  ;;  %960 = vmatmul.bf16.vlgmr.msra.gmra.mxu0 %v2495_v5  ;;  %v1973_v5 = vld [vmem:[#allocation2 + $0x3c8] sm:$0xf0] }
  0x6e   :  { %1004 = vmatpush.bf16.msrb.mxu0 %v1808_v8  ;;  %973 = vmatmul.bf16.vlgmr.msra.gmra.mxu1 %v2499_v7  ;;  %v1912_v7 = vor.u32 %v2297_v43, %v1909_v44  ;;  %v1976_v50 = vor.u32 %v2313_v45, %v1973_v5  ;;  %v1957_v4 = vld [vmem:[#allocation2 + $0x3a8] sm:$0xf0]  ;;  %v1768_v8 = vor.u32 %v2261_v60, %v1765_v61  ;;  %v2051_v45 = vld [vmem:[#allocation4 + $0x60] sm:$0xf]  ;;  %v2334_v5 = vld [vmem:[#allocation4 + $0x64] sm:$0xf0] }
  0x6f   :  { %1017 = vmatpush.bf16.msrb.mxu1 %v1872_v9  ;;  %986 = vmatmul.bf16.vlgmr.msra.gmra.mxu2 %v2483_v57  ;;  %v2281_v57 = vld [vmem:[#allocation2 + $0x2c4] sm:$0xf]  ;;  %v1832_v9 = vor.u32 %v2277_v62, %v1829_v0  ;;  %v2029_v61 = vld [vmem:[#allocation4 + $0x38] sm:$0xf0]  ;;  %v2326_v0 = vld [vmem:[#allocation4 + $0x24] sm:$0xf0] }
  0x70   :  { %1030 = vmatpush.bf16.msrb.mxu2 %v1936_v10  ;;  %999 = vmatmul.bf16.vlgmr.msra.gmra.mxu3 %v2497_v6  ;;  %v1784_v6 = vor.u32 %v2265_v38, %v1781_v39  ;;  %v1848_v46 = vor.u32 %v2281_v57, %v1845_v42  ;;  %v1896_v10 = vor.u32 %v2293_v1, %v1893_v2  ;;  %v2335_v38 = vld [vmem:[#allocation4 + $0x74] sm:$0xf]  ;;  %v2061_v39 = vld [vmem:[#allocation4 + $0x78] sm:$0xf0]  ;;  %v2325_v1 = vld [vmem:[#allocation4 + $0x24] sm:$0xf] }
  0x71   :  { %1043 = vmatpush.bf16.msrb.mxu3 %v2000_v14  ;;  %v1960_v14 = vor.u32 %v2309_v3, %v1957_v4  ;;  %v1944_v42 = vor.u32 %v2305_v30, %v1941_v32  ;;  %v2064_v44 = vor.u32 %v2335_v38, %v2061_v39  ;;  %v2021_v3 = vld [vmem:[#allocation4 + $0x28] sm:$0xf0] }
  0x72   :  { %1005 = vmatpush.bf16.msrb.mxu0 %v1800_v20  ;;  %v1760_v20 = vor.u32 %v2259_v11, %v1757_v12  ;;  %v2011_v11 = vld [vmem:[#allocation4 + $0x10] sm:$0xf]  ;;  %v2324_v12 = vld [vmem:[#allocation4 + $0x14] sm:$0xf0] }
  0x73   :  { %1018 = vmatpush.bf16.msrb.mxu1 %v1864_v21  ;;  %v2257_v21 = vld [vmem:[#allocation2 + $0x204] sm:$0xf] }
  0x74   :  { %1031 = vmatpush.bf16.msrb.mxu2 %v1928_v22  ;;  %v1824_v22 = vor.u32 %v2275_v13, %v1821_v15  ;;  %v2323_v13 = vld [vmem:[#allocation4 + $0x14] sm:$0xf]  ;;  %v2013_v15 = vld [vmem:[#allocation4 + $0x18] sm:$0xf0] }
  0x75   :  { %1044 = vmatpush.bf16.msrb.mxu3 %v1992_v26  ;;  %v1813_v26 = vld [vmem:[#allocation2 + $0x288] sm:$0xf0]  ;;  %v2016_v16 = vor.u32 %v2323_v13, %v2013_v15  ;;  %v2342_v15 = vld [vmem:[#allocation4 + $0xa4] sm:$0xf0] }
  0x76   :  { %1006 = vmatpush.bf16.msrb.mxu0 %v1792_v33  ;;  %v2059_v33 = vld [vmem:[#allocation4 + $0x70] sm:$0xf]  ;;  %v1816_v57 = vor.u32 %v2273_v25, %v1813_v26 }
  0x77   :  { %1019 = vmatpush.bf16.msrb.mxu1 %v1856_v34  ;;  %v2336_v34 = vld [vmem:[#allocation4 + $0x74] sm:$0xf0] }
  0x78   :  { %1032 = vmatpush.bf16.msrb.mxu2 %v1920_v37  ;;  %v1752_v37 = vor.u32 %v2257_v21, %v1749_v24  ;;  %v2060_v43 = vor.u32 %v2336_v34, %v2059_v33  ;;  %v204_v24 = vperm.slane %v2539_v17, 0 }
  0x79   :  { %1045 = vmatpush.bf16.msrb.mxu3 %v1984_v41  ;;  %v1880_v41 = vor.u32 %v2289_v28, %v1877_v29 }
  0x7a   :  { %1007 = vmatpush.bf16.msrb.mxu0 %v1784_v6  ;;  %v2333_v6 = vld [vmem:[#allocation4 + $0x64] sm:$0xf] }
  0x7b   :  { %1020 = vmatpush.bf16.msrb.mxu1 %v1848_v46  ;;  %v2052_v46 = vor.u32 %v2334_v5, %v2051_v45  ;;  %v2352_v45 = vld [vmem:[#allocation4 + $0xf4] sm:$0xf0]  ;;  %v2351_v5 = vld [vmem:[#allocation4 + $0xf4] sm:$0xf] }
  0x7c   :  { %1033 = vmatpush.bf16.msrb.mxu2 %v1912_v7  ;;  %v2053_v7 = vld [vmem:[#allocation4 + $0x68] sm:$0xf0] }
  0x7d   :  { %1046 = vmatpush.bf16.msrb.mxu3 %v1976_v50  ;;  %v2056_v47 = vor.u32 %v2333_v6, %v2053_v7  ;;  %v2331_v50 = vld [vmem:[#allocation4 + $0x54] sm:$0xf]  ;;  %v2115_v7 = vld [vmem:[#allocation4 + $0xe0] sm:$0xf] }
  0x7e   :  { %1008 = vmatpush.bf16.msrb.mxu0 %v1776_v56  ;;  %v2027_v56 = vld [vmem:[#allocation4 + $0x30] sm:$0xf] }
  0x7f   :  { %1021 = vmatpush.bf16.msrb.mxu1 %v1840_v58  ;;  %v2328_v58 = vld [vmem:[#allocation4 + $0x34] sm:$0xf0] }
  0x80   :  { %1034 = vmatpush.bf16.msrb.mxu2 %v1904_v59  ;;  %v2327_v59 = vld [vmem:[#allocation4 + $0x34] sm:$0xf]  ;;  %v2028_v60 = vor.u32 %v2328_v58, %v2027_v56 }
  0x81   :  { %1047 = vmatpush.bf16.msrb.mxu3 %v1968_v63  ;;  %v2032_v62 = vor.u32 %v2327_v59, %v2029_v61  ;;  %v2019_v63 = vld [vmem:[#allocation4 + $0x20] sm:$0xf]  ;;  %v2347_v56 = vld [vmem:[#allocation4 + $0xd4] sm:$0xf] }
  0x82   :  { %1009 = vmatpush.bf16.msrb.mxu0 %v1768_v8  ;;  %v2020_v2 = vor.u32 %v2326_v0, %v2019_v63  ;;  %v2024_v8 = vor.u32 %v2325_v1, %v2021_v3  ;;  %v2346_v63 = vld [vmem:[#allocation4 + $0xc4] sm:$0xf0]  ;;  %v2345_v1 = vld [vmem:[#allocation4 + $0xc4] sm:$0xf] }
  0x83   :  { %1022 = vmatpush.bf16.msrb.mxu1 %v1832_v9 }
  0x84   :  { %1035 = vmatpush.bf16.msrb.mxu2 %v1896_v10 }
  0x85   :  { %1048 = vmatpush.bf16.msrb.mxu3 %v1960_v14  ;;  %v2012_v14 = vor.u32 %v2324_v12, %v2011_v11  ;;  %v2093_v12 = vld [vmem:[#allocation4 + $0xb8] sm:$0xf0] }
  0x86   :  { %1010 = vmatpush.bf16.msrb.mxu0 %v1760_v20  ;;  %v2321_v20 = vld [vmem:[#allocation4 + $0x4] sm:$0xf] }
  0x87   :  { %1023 = vmatpush.bf16.msrb.mxu1 %v1824_v22  ;;  %v2004_v22 = vor.u32 %v2322_v19, %v2003_v18 }
  0x88   :  { %1036 = vmatpush.bf16.msrb.mxu2 %v1888_v23  ;;  %v2005_v23 = vld [vmem:[#allocation4 + $0x8] sm:$0xf0] }
  0x89   :  { %1049 = vmatpush.bf16.msrb.mxu3 %v1952_v27  ;;  %v2008_v26 = vor.u32 %v2321_v20, %v2005_v23  ;;  %v2085_v20 = vld [vmem:[#allocation4 + $0xa8] sm:$0xf0]  ;;  %v2075_v23 = vld [vmem:[#allocation4 + $0x90] sm:$0xf] }
  0x8a   :  { %1011 = vmatpush.bf16.msrb.mxu0 %v1752_v37 }
  0x8b   :  { %1024 = vmatpush.bf16.msrb.mxu1 %v1816_v57 }
  0x8c   :  { %1037 = vmatpush.bf16.msrb.mxu2 %v1880_v41 }
  0x8d   :  { %1050 = vmatpush.bf16.msrb.mxu3 %v1944_v42  ;;  %1012 = vmatmul.bf16.vlgmr.msrb.gmra.mxu0 %v2518_v35  ;;  %v2045_v35 = vld [vmem:[#allocation4 + $0x58] sm:$0xf0] }
  0x8e   :  { %1258 = vmatpush.bf16.msra.mxu0 %v2060_v43  ;;  %1025 = vmatmul.bf16.vlgmr.msrb.gmra.mxu1 %v2522_v40  ;;  %v2048_v40 = vor.u32 %v2331_v50, %v2045_v35  ;;  %v2117_v35 = vld [vmem:[#allocation4 + $0xe8] sm:$0xf0] }
  0x8f   :  { %1038 = vmatmul.bf16.vlgmr.msrb.gmra.mxu2 %v2516_v31  ;;  %v2037_v31 = vld [vmem:[#allocation4 + $0x48] sm:$0xf0] }
  0x90   :  { %1284 = vmatpush.bf16.msra.mxu2 %v2064_v44  ;;  %1051 = vmatmul.bf16.vlgmr.msrb.gmra.mxu3 %v2520_v36  ;;  %v2036_v36 = vor.u32 %v2330_v53, %v2035_v52  ;;  %v2040_v55 = vor.u32 %v2329_v54, %v2037_v31  ;;  %v2123_v44 = vld [vmem:[#allocation4 + $0xf0] sm:$0xf] }
  0x91   :  { %v2124_v6 = vor.u32 %v2352_v45, %v2123_v44 }
  0x92   :  { %1259 = vmatpush.bf16.msra.mxu0 %v2052_v46  ;;  %v2125_v46 = vld [vmem:[#allocation4 + $0xf8] sm:$0xf0] }
  0x93   :  { %v2128_v50 = vor.u32 %v2351_v5, %v2125_v46  ;;  %1271 = vmatpush.bf16.msra.mxu1 %v2124_v6 }
  0x94   :  { %1285 = vmatpush.bf16.msra.mxu2 %v2056_v47  ;;  %v2350_v47 = vld [vmem:[#allocation4 + $0xe4] sm:$0xf0] }
  0x95   :  { %v2116_v53 = vor.u32 %v2350_v47, %v2115_v7  ;;  %1297 = vmatpush.bf16.msra.mxu3 %v2128_v50 }
  0x96   :  { %1260 = vmatpush.bf16.msra.mxu0 %v2044_v51  ;;  %v2349_v51 = vld [vmem:[#allocation4 + $0xe4] sm:$0xf] }
  0x97   :  { %v2120_v54 = vor.u32 %v2349_v51, %v2117_v35  ;;  %1272 = vmatpush.bf16.msra.mxu1 %v2116_v53 }
  0x98   :  { %1286 = vmatpush.bf16.msra.mxu2 %v2048_v40 }
  0x99   :  { %1298 = vmatpush.bf16.msra.mxu3 %v2120_v54 }
  0x9a   :  { %1261 = vmatpush.bf16.msra.mxu0 %v2036_v36  ;;  %v2107_v36 = vld [vmem:[#allocation4 + $0xd0] sm:$0xf] }
  0x9c   :  { %1287 = vmatpush.bf16.msra.mxu2 %v2040_v55  ;;  %v2348_v55 = vld [vmem:[#allocation4 + $0xd4] sm:$0xf0] }
  0x9d   :  { %v2108_v59 = vor.u32 %v2348_v55, %v2107_v36  ;;  %v2360_v55 = vld [vmem:[%s2605_s5 + $0x38] sm:$0xff] }
  0x9e   :  { %1262 = vmatpush.bf16.msra.mxu0 %v2028_v60  ;;  %v2109_v60 = vld [vmem:[#allocation4 + $0xd8] sm:$0xf0] }
  0x9f   :  { %v2112_v0 = vor.u32 %v2347_v56, %v2109_v60  ;;  %1273 = vmatpush.bf16.msra.mxu1 %v2108_v59  ;;  %v2368_v56 = vld [vmem:[%s2605_s5 + $0x78] sm:$0xff]  ;;  %v2367_v59 = vld [vmem:[%s2605_s5 + $0x70] sm:$0xff]  ;;  %v2358_v60 = vld [vmem:[%s2605_s5 + $0x28] sm:$0xff] }
  0xa0   :  { %1288 = vmatpush.bf16.msra.mxu2 %v2032_v62  ;;  %v2099_v62 = vld [vmem:[#allocation4 + $0xc0] sm:$0xf] }
  0xa1   :  { %v2100_v3 = vor.u32 %v2346_v63, %v2099_v62  ;;  %1299 = vmatpush.bf16.msra.mxu3 %v2112_v0  ;;  %v2357_v62 = vld [vmem:[%s2605_s5 + $0x20] sm:$0xff]  ;;  %v2356_v0 = vld [vmem:[%s2605_s5 + $0x18] sm:$0xff] }
  0xa2   :  { %1263 = vmatpush.bf16.msra.mxu0 %v2020_v2  ;;  %v2101_v2 = vld [vmem:[#allocation4 + $0xc8] sm:$0xf0]  ;;  %v2365_v63 = vld [vmem:[%s2605_s5 + $0x60] sm:$0xff] }
  0xa3   :  { %1274 = vmatpush.bf16.msra.mxu1 %v2100_v3  ;;  %v2355_v3 = vld [vmem:[%s2605_s5 + $0x10] sm:$0xff] }
  0xa4   :  { %1289 = vmatpush.bf16.msra.mxu2 %v2024_v8  ;;  %v2091_v8 = vld [vmem:[#allocation4 + $0xb0] sm:$0xf] }
  0xa6   :  { %1264 = vmatpush.bf16.msra.mxu0 %v2012_v14  ;;  %v2083_v14 = vld [vmem:[#allocation4 + $0xa0] sm:$0xf] }
  0xa7   :  { %v2084_v19 = vor.u32 %v2342_v15, %v2083_v14  ;;  %v2361_v14 = vld [vmem:[%s2605_s5 + $0x40] sm:$0xff] }
  0xa8   :  { %1290 = vmatpush.bf16.msra.mxu2 %v2016_v16  ;;  %v2341_v16 = vld [vmem:[#allocation4 + $0xa4] sm:$0xf]  ;;  %v1092_v15 = vld [vmem:[%s2604_s4] sm:$0x3] }
  0xaa   :  { %v857_v4 = vpop.f32.mrf.mxu0  ;;  %1265 = vmatpush.bf16.msra.mxu0 %v2004_v22  ;;  %v2088_v22 = vor.u32 %v2341_v16, %v2085_v20  ;;  %v1094_v16 = vperm.slane %v1092_v15, 0  ;;  %v1095_v20 = vperm.slane %v1092_v15, 1 }
  0xab   :  { %v870_v9 = vpop.f32.mrf.mxu1  ;;  %v858_v29 = vadd.f32 %v857_v4, %v204_v24  ;;  %v2104_v4 = vor.u32 %v2345_v1, %v2101_v2  ;;  %v2340_v24 = vld [vmem:[#allocation4 + $0x94] sm:$0xf0] }
  0xac   :  { %1291 = vmatpush.bf16.msra.mxu2 %v2008_v26  ;;  %v2076_v26 = vor.u32 %v2340_v24, %v2075_v23  ;;  %v2364_v1 = vld [vmem:[%s2605_s5 + $0x58] sm:$0xff] }
  0xad   :  { %v871_v32 = vadd.f32 %v870_v9, %v858_v29  ;;  %1300 = vmatpush.bf16.msra.mxu3 %v2104_v4  ;;  %v2344_v9 = vld [vmem:[#allocation4 + $0xb4] sm:$0xf0] }
  0xae   :  { %v2092_v11 = vor.u32 %v2344_v9, %v2091_v8  ;;  %1446 = vmatpush.bf16.msrb.mxu0 %v2360_v55 }
  0xb0   :  { %1275 = vmatpush.bf16.msra.mxu1 %v2092_v11  ;;  %v2363_v11 = vld [vmem:[%s2605_s5 + $0x50] sm:$0xff] }
  0xb2   :  { %v883_v10 = vpop.f32.mrf.mxu2  ;;  %v859_v25 = vpop.f32.mrf.mxu0 }
  0xb3   :  { %v896_v21 = vpop.f32.mrf.mxu3  ;;  %v872_v27 = vpop.f32.mrf.mxu1  ;;  %v884_v33 = vadd.f32 %v883_v10, %v871_v32  ;;  %v2343_v10 = vld [vmem:[#allocation4 + $0xb4] sm:$0xf]  ;;  %v2067_v32 = vld [vmem:[#allocation4 + $0x80] sm:$0xf] }
  0xb4   :  { %v2096_v13 = vor.u32 %v2343_v10, %v2093_v12  ;;  %1276 = vmatpush.bf16.msra.mxu1 %v2084_v19  ;;  %v2339_v25 = vld [vmem:[#allocation4 + $0x94] sm:$0xf]  ;;  %v2077_v27 = vld [vmem:[#allocation4 + $0x98] sm:$0xf0]  ;;  %v2354_v10 = vld [vmem:[%s2605_s5 + $0x8] sm:$0xff] }
  0xb5   :  { %v897_v34 = vadd.f32 %v896_v21, %v884_v33  ;;  %v2080_v29 = vor.u32 %v2339_v25, %v2077_v27  ;;  %v2338_v33 = vld [vmem:[#allocation4 + $0x84] sm:$0xf0]  ;;  %v2353_v12 = vld [vmem:[%s2605_s5] sm:$0xff] }
  0xb6   :  { %1301 = vmatpush.bf16.msra.mxu3 %v2096_v13  ;;  %v2362_v13 = vld [vmem:[%s2605_s5 + $0x48] sm:$0xff] }
  0xb8   :  { %1277 = vmatpush.bf16.msra.mxu1 %v2076_v26 }
  0xba   :  { %v885_v28 = vpop.f32.mrf.mxu2  ;;  %1302 = vmatpush.bf16.msra.mxu3 %v2088_v22 }
  0xbb   :  { %v898_v30 = vpop.f32.mrf.mxu3 }
  0xbe   :  { %1303 = vmatpush.bf16.msra.mxu3 %v2080_v29 }
  0xca   :  { %v909_v37 = vpop.f32.mrf.mxu0 }
  0xcb   :  { %v910_v38 = vadd.f32 %v909_v37, %v897_v34  ;;  %v922_v39 = vpop.f32.mrf.mxu1  ;;  %v2337_v34 = vld [vmem:[#allocation4 + $0x84] sm:$0xf] }
  0xcd   :  { %v923_v57 = vadd.f32 %v922_v39, %v910_v38  ;;  %v2068_v38 = vor.u32 %v2338_v33, %v2067_v32  ;;  %v2069_v39 = vld [vmem:[#allocation4 + $0x88] sm:$0xf0]  ;;  %v2373_v33 = vld [vmem:[%s2606_s6] ss:$0 sm:$0xff] }
  0xcf   :  { %1278 = vmatpush.bf16.msra.mxu1 %v2068_v38 }
  0xd2   :  { %v935_v41 = vpop.f32.mrf.mxu2  ;;  %v911_v49 = vpop.f32.mrf.mxu0 }
  0xd3   :  { %v936_v42 = vadd.f32 %v935_v41, %v923_v57  ;;  %v948_v43 = vpop.f32.mrf.mxu3  ;;  %v924_v52 = vpop.f32.mrf.mxu1  ;;  %v2072_v41 = vor.u32 %v2337_v34, %v2069_v39  ;;  %1459 = vmatpush.bf16.msrb.mxu1 %v2368_v56 }
  0xd5   :  { %v949_v48 = vadd.f32 %v948_v43, %v936_v42  ;;  %1304 = vmatpush.bf16.msra.mxu3 %v2072_v41  ;;  %v205_v42 = vperm.slane %v2539_v17, 1 }
  0xd7   :  { %v1056_v40 = vmax.f32 %v949_v48, 0.0  ;;  %1460 = vmatpush.bf16.msrb.mxu1 %v2367_v59 }
  0xd9   :  { %v1058_v31 = vpack.c.bf16 %v1056_v40, %v1056_v40 }
  0xda   :  { %v937_v58 = vpop.f32.mrf.mxu2 }
  0xdb   :  { %1266 = vmatmul.bf16.vlgmr.msra.gmra.mxu0 %v1058_v31  ;;  %1292 = vmatmul.bf16.vlgmr.msra.gmra.mxu2 %v1058_v31  ;;  %v950_v61 = vpop.f32.mrf.mxu3  ;;  %v2359_v58 = vld [vmem:[%s2605_s5 + $0x30] sm:$0xff] }
  0xdc   :  { %1447 = vmatpush.bf16.msrb.mxu0 %v2359_v58  ;;  %v2366_v61 = vld [vmem:[%s2605_s5 + $0x68] sm:$0xff] }
  0xdd   :  { %1461 = vmatpush.bf16.msrb.mxu1 %v2366_v61 }
  0xe0   :  { %1448 = vmatpush.bf16.msrb.mxu0 %v2358_v60 }
  0xe1   :  { %1462 = vmatpush.bf16.msrb.mxu1 %v2365_v63 }
  0xe4   :  { %1449 = vmatpush.bf16.msrb.mxu0 %v2357_v62 }
  0xe5   :  { %1463 = vmatpush.bf16.msrb.mxu1 %v2364_v1 }
  0xe8   :  { %1450 = vmatpush.bf16.msrb.mxu0 %v2356_v0 }
  0xe9   :  { %1464 = vmatpush.bf16.msrb.mxu1 %v2363_v11 }
  0xea   :  { %v961_v18 = vpop.f32.mrf.mxu0 }
  0xeb   :  { %v974_v21 = vpop.f32.mrf.mxu1  ;;  %v962_v45 = vadd.f32 %v961_v18, %v205_v42 }
  0xec   :  { %1451 = vmatpush.bf16.msrb.mxu0 %v2355_v3 }
  0xed   :  { %v975_v5 = vadd.f32 %v974_v21, %v962_v45  ;;  %1465 = vmatpush.bf16.msrb.mxu1 %v2362_v13 }
  0xf0   :  { %1452 = vmatpush.bf16.msrb.mxu0 %v2354_v10 }
  0xf1   :  { %1466 = vmatpush.bf16.msrb.mxu1 %v2361_v14 }
  0xf2   :  { %v987_v28 = vpop.f32.mrf.mxu2  ;;  %v963_v37 = vpop.f32.mrf.mxu0 }
  0xf3   :  { %v1000_v30 = vpop.f32.mrf.mxu3  ;;  %v976_v57 = vpop.f32.mrf.mxu1  ;;  %v988_v6 = vadd.f32 %v987_v28, %v975_v5 }
  0xf4   :  { %1453 = vmatpush.bf16.msrb.mxu0 %v2353_v12 }
  0xf5   :  { %v1001_v46 = vadd.f32 %v1000_v30, %v988_v6 }
  0xfa   :  { %v989_v43 = vpop.f32.mrf.mxu2 }
  0xfb   :  { %v1002_v44 = vpop.f32.mrf.mxu3 }
 0x10a   :  { %v1013_v7 = vpop.f32.mrf.mxu0 }
 0x10b   :  { %v1026_v47 = vpop.f32.mrf.mxu1  ;;  %v1014_v48 = vadd.f32 %v1013_v7, %v1001_v46 }
 0x10d   :  { %v1027_v49 = vadd.f32 %v1026_v47, %v1014_v48 }
 0x112   :  { %v1039_v50 = vpop.f32.mrf.mxu2  ;;  %v1015_v52 = vpop.f32.mrf.mxu0 }
 0x113   :  { %v1040_v51 = vadd.f32 %v1039_v50, %v1027_v49  ;;  %v1052_v35 = vpop.f32.mrf.mxu3  ;;  %v1028_v53 = vpop.f32.mrf.mxu1 }
 0x115   :  { %v1053_v40 = vadd.f32 %v1052_v35, %v1040_v51 }
 0x117   :  { %v1057_v54 = vmax.f32 %v1053_v40, 0.0 }
 0x119   :  { %v1059_v31 = vpack.c.bf16 %v1057_v54, %v1057_v54 }
 0x11a   :  { %v1041_v36 = vpop.f32.mrf.mxu2 }
 0x11b   :  { %v1054_v17 = vpop.f32.mrf.mxu3  ;;  %1279 = vmatmul.bf16.vlgmr.msra.gmra.mxu1 %v1059_v31  ;;  %1305 = vmatmul.bf16.vlgmr.msra.gmra.mxu3 %v1059_v31 }
 0x158   :  { %v1267_v2 = vpop.f32.mrf.mxu0 }
 0x159   :  { %v1268_v18 = vadd.f32 %v1267_v2, %v1094_v16 }
 0x15e   :  { %v1293_v4 = vpop.f32.mrf.mxu2 }
 0x15f   :  { %v1294_v23 = vadd.f32 %v1293_v4, %v1095_v20 }
 0x160   :  { %v1269_v8 = vpop.f32.mrf.mxu0 }
 0x166   :  { %v1295_v9 = vpop.f32.mrf.mxu2 }
 0x198   :  { %v1280_v19 = vpop.f32.mrf.mxu1 }
 0x199   :  { %v1281_v21 = vadd.f32 %v1280_v19, %v1268_v18 }
 0x19b   :  { %v1310_v22 = vmax.f32 %v1281_v21, 0.0 }
 0x19d   :  { %v1312_v24 = vpack.c.bf16 %v1310_v22, %v1310_v22 }
 0x19e   :  { %v1306_v25 = vpop.f32.mrf.mxu3 }
 0x19f   :  { %v1307_v26 = vadd.f32 %v1306_v25, %v1294_v23  ;;  %1454 = vmatmul.bf16.vlgmr.msrb.gmra.mxu0 %v1312_v24 }
 0x1a0   :  { %v1282_v27 = vpop.f32.mrf.mxu1 }
 0x1a1   :  { %v1311_v28 = vmax.f32 %v1307_v26, 0.0 }
 0x1a3   :  { %v1313_v29 = vpack.c.bf16 %v1311_v28, %v1311_v28 }
 0x1a5   :  { %1467 = vmatmul.bf16.vlgmr.msrb.gmra.mxu1 %v1313_v29 }
 0x1a6   :  { %v1308_v30 = vpop.f32.mrf.mxu3 }
 0x21c   :  { %v1455_v32 = vpop.f32.mrf.mxu0 }
 0x21d   :  { %v1456_v34 = vadd.f32 %v2373_v33, %v1455_v32 }
 0x222   :  { %v1468_v37 = vpop.f32.mrf.mxu1 }
 0x223   :  { %v1469_v38 = vadd.f32 %v1468_v37, %v1456_v34 }
 0x224   :  { %v1457_v39 = vpop.f32.mrf.mxu0 }
 0x225   :  { %1472 = vmax.xlane.f32.xlu0 %v1469_v38 }
 0x22a   :  { %v1470_v57 = vpop.f32.mrf.mxu1 }
 0x298   :  { %v1473_v41 = vpop.xlane.xlu0 %1472 }
 0x299   :  { %v1474_v42 = vsub.f32 %v1469_v38, %v1473_v41 }
 0x29b   :  { %v1475_v43 = vmul.f32 1.442695, %v1474_v42 }
 0x29d   :  { %2374 = vpow2.f32 %v1475_v43 }
 0x2a3   :  { %v2375_v44 = vpop.eup %2374 }
 0x2a4   :  { %1477 = vadd.xlane.f32.xlu0 %v2375_v44 }
 0x317   :  { %v1478_v45 = vpop.xlane.xlu0 %1477 }
 0x318   :  { %2376 = vlog2.f32 %v1478_v45 }
 0x31e   :  { %v2377_v5 = vpop.eup %2376 }
 0x31f   :  { %v1480_v6 = vmul.f32 0.6931472, %v2377_v5 }
 0x321   :  { %v1481_v46 = vsub.f32 %v1474_v42, %v1480_v6 }
 0x323   :  { %1482 = vst [vmem:[%s2607_s7] sm:$0xff] %v1481_v46 }
 0x324   :  { %1487 = vsyncpa [#allocation3], 1 }
 0x325   :  { %1488 = vsyncpa [#allocation5], 1 }

// kernel: forward.1
= control target key start
LH: loop header
LB: loop body
LE: loop exit
PB: predicated region body
PF: predicated region fallthrough
CT: control target
= control target key end

     0   :  { %12 = vsyncpa [#allocation3], 0  ;;  %s2600_s0 = inlined_call_operand.vmem [shape: f32[8,1024], index: 0, kind: input, shape index: {}]   ;;  %s2601_s1 = inlined_call_operand.hbm [shape: bf16[1024,256], index: 1, kind: input, shape index: {}]   ;;  %s2602_s2 = inlined_call_operand.vmem [shape: f32[1,256], index: 2, kind: input, shape index: {}]   ;;  %s2603_s3 = inlined_call_operand.hbm [shape: bf16[256,256], index: 3, kind: input, shape index: {}]   ;;  %s2604_s4 = inlined_call_operand.vmem [shape: f32[1,256], index: 4, kind: input, shape index: {}]   ;;  %s2605_s5 = inlined_call_operand.vmem [shape: bf16[256,128], index: 5, kind: input, shape index: {}]   ;;  %s2606_s6 = inlined_call_operand.vmem [shape: f32[1,128], index: 6, kind: input, shape index: {}]   ;;  %s2607_s7 = inlined_call_operand.vmem [shape: f32[8,128], index: 7, kind: output, shape index: {}]  }
   0x1   :  { %s20_s26 = sshll.u32 %s2601_s1, 4  ;;  %s21_s26 = int_to_ptr.hbm [resolvable:$true] %s20_s26 }
   0x2   :  { %13 = vsyncpa [#allocation5], 0  ;;  %s2430_s27 = smov [#allocation2]   ;;  %s35_s8 = sshll.u32 %s2603_s3, 4  ;;  %s36_s8 = int_to_ptr.hbm [resolvable:$true] %s35_s8 }
   0x3   :  { %s22_s28 = sshll.u32 %s2430_s27, 4  ;;  %s2431_s9 = smov 128   ;;  %s23_s28 = int_to_ptr.vmem [resolvable:$true] %s22_s28 }
   0x4   :  { %s2432_s10 = smov 8   ;;  %s2433_s11 = smov [#allocation4]  }
   0x5   :  { %28 = dma.hbm_to_vmem [thread:$0]  %s21_s26, 16384, %s23_s28, [#allocation3], %s2431_s9, %s2431_s9, %s2432_s10  }
   0x6   :  { %s37_s12 = sshll.u32 %s2433_s11, 4  ;;  %s38_s12 = int_to_ptr.vmem [resolvable:$true] %s37_s12 }
   0x7   :  { %43 = dma.hbm_to_vmem [thread:$0]  %s36_s8, 4096, %s38_s12, [#allocation5], %s2431_s9, %s2431_s9, %s2432_s10  }
   0x8   :  { %2426 = dma.done.wait [#allocation3], 16384  }
   0x9   :  { %2427 = vsyncadd [#allocation3], 4294950912 }
   0xa   :  { %2428 = dma.done.wait [#allocation5], 4096  }
   0xb   :  { %2429 = vsyncadd [#allocation5], 4294963200  ;;  %v1547_v0 = vld [vmem:[#allocation2 + $0x70] sm:$0xf]  ;;  %v2208_v1 = vld [vmem:[#allocation2 + $0x74] sm:$0xf0] }
   0xc   :  { %v1611_v2 = vld [vmem:[#allocation2 + $0xf0] sm:$0xf]  ;;  %v1548_v3 = vor.u32 %v2208_v1, %v1547_v0  ;;  %v2224_v4 = vld [vmem:[#allocation2 + $0xf4] sm:$0xf0]  ;;  %v1539_v11 = vld [vmem:[#allocation2 + $0x60] sm:$0xf] }
   0xd   :  { %v1675_v5 = vld [vmem:[#allocation2 + $0x170] sm:$0xf]  ;;  %v2240_v6 = vld [vmem:[#allocation2 + $0x174] sm:$0xf0]  ;;  %v1612_v7 = vor.u32 %v2224_v4, %v1611_v2  ;;  %v2206_v13 = vld [vmem:[#allocation2 + $0x64] sm:$0xf0] }
   0xe   :  { %v1676_v8 = vor.u32 %v2240_v6, %v1675_v5  ;;  %v1739_v9 = vld [vmem:[#allocation2 + $0x1f0] sm:$0xf]  ;;  %v2256_v10 = vld [vmem:[#allocation2 + $0x1f4] sm:$0xf0]  ;;  %848 = vmatpush.bf16.msra.mxu0 %v1548_v3  ;;  %v1603_v14 = vld [vmem:[#allocation2 + $0xe0] sm:$0xf]  ;;  %v1540_v16 = vor.u32 %v2206_v13, %v1539_v11 }
   0xf   :  { %v1740_v12 = vor.u32 %v2256_v10, %v1739_v9  ;;  %v2222_v15 = vld [vmem:[#allocation2 + $0xe4] sm:$0xf0]  ;;  %861 = vmatpush.bf16.msra.mxu1 %v1612_v7  ;;  %v1667_v18 = vld [vmem:[#allocation2 + $0x160] sm:$0xf]  ;;  %v1531_v23 = vld [vmem:[#allocation2 + $0x50] sm:$0xf] }
  0x10   :  { %874 = vmatpush.bf16.msra.mxu2 %v1676_v8  ;;  %v1604_v17 = vor.u32 %v2222_v15, %v1603_v14  ;;  %v2238_v19 = vld [vmem:[#allocation2 + $0x164] sm:$0xf0]  ;;  %v1731_v20 = vld [vmem:[#allocation2 + $0x1e0] sm:$0xf]  ;;  %v2204_v24 = vld [vmem:[#allocation2 + $0x54] sm:$0xf0] }
  0x11   :  { %887 = vmatpush.bf16.msra.mxu3 %v1740_v12  ;;  %v1668_v21 = vor.u32 %v2238_v19, %v1667_v18  ;;  %v2254_v22 = vld [vmem:[#allocation2 + $0x1e4] sm:$0xf0]  ;;  %v1595_v26 = vld [vmem:[#allocation2 + $0xd0] sm:$0xf]  ;;  %v2220_v27 = vld [vmem:[#allocation2 + $0xd4] sm:$0xf0]  ;;  %v1532_v29 = vor.u32 %v2204_v24, %v1531_v23 }
  0x12   :  { %v1732_v25 = vor.u32 %v2254_v22, %v1731_v20  ;;  %v1659_v28 = vld [vmem:[#allocation2 + $0x150] sm:$0xf]  ;;  %849 = vmatpush.bf16.msra.mxu0 %v1540_v16  ;;  %v2236_v30 = vld [vmem:[#allocation2 + $0x154] sm:$0xf0]  ;;  %v1596_v33 = vor.u32 %v2220_v27, %v1595_v26  ;;  %v1523_v35 = vld [vmem:[#allocation2 + $0x40] sm:$0xf] }
  0x13   :  { %v1723_v31 = vld [vmem:[#allocation2 + $0x1d0] sm:$0xf]  ;;  %v2252_v32 = vld [vmem:[#allocation2 + $0x1d4] sm:$0xf0]  ;;  %862 = vmatpush.bf16.msra.mxu1 %v1604_v17  ;;  %v1660_v34 = vor.u32 %v2236_v30, %v1659_v28  ;;  %v2202_v36 = vld [vmem:[#allocation2 + $0x44] sm:$0xf0] }
  0x14   :  { %875 = vmatpush.bf16.msra.mxu2 %v1668_v21  ;;  %v1587_v37 = vld [vmem:[#allocation2 + $0xc0] sm:$0xf]  ;;  %v1724_v38 = vor.u32 %v2252_v32, %v1723_v31  ;;  %v2218_v39 = vld [vmem:[#allocation2 + $0xc4] sm:$0xf0]  ;;  %v1524_v44 = vor.u32 %v2202_v36, %v1523_v35  ;;  %v1515_v47 = vld [vmem:[#allocation2 + $0x30] sm:$0xf] }
  0x15   :  { %888 = vmatpush.bf16.msra.mxu3 %v1732_v25  ;;  %v1651_v40 = vld [vmem:[#allocation2 + $0x140] sm:$0xf]  ;;  %v2234_v41 = vld [vmem:[#allocation2 + $0x144] sm:$0xf0]  ;;  %v1588_v45 = vor.u32 %v2218_v39, %v1587_v37  ;;  %v2200_v48 = vld [vmem:[#allocation2 + $0x34] sm:$0xf0] }
  0x16   :  { %v1715_v42 = vld [vmem:[#allocation2 + $0x1c0] sm:$0xf]  ;;  %v2250_v43 = vld [vmem:[#allocation2 + $0x1c4] sm:$0xf0]  ;;  %850 = vmatpush.bf16.msra.mxu0 %v1532_v29  ;;  %v1652_v46 = vor.u32 %v2234_v41, %v1651_v40  ;;  %v1579_v49 = vld [vmem:[#allocation2 + $0xb0] sm:$0xf]  ;;  %v1516_v56 = vor.u32 %v2200_v48, %v1515_v47 }
  0x17   :  { %863 = vmatpush.bf16.msra.mxu1 %v1596_v33  ;;  %v1716_v50 = vor.u32 %v2250_v43, %v1715_v42  ;;  %v2216_v51 = vld [vmem:[#allocation2 + $0xb4] sm:$0xf0]  ;;  %v1643_v52 = vld [vmem:[#allocation2 + $0x130] sm:$0xf]  ;;  %v1507_v59 = vld [vmem:[#allocation2 + $0x20] sm:$0xf] }
  0x18   :  { %876 = vmatpush.bf16.msra.mxu2 %v1660_v34  ;;  %v2232_v53 = vld [vmem:[#allocation2 + $0x134] sm:$0xf0]  ;;  %v1707_v54 = vld [vmem:[#allocation2 + $0x1b0] sm:$0xf]  ;;  %v1580_v57 = vor.u32 %v2216_v51, %v1579_v49  ;;  %v2198_v60 = vld [vmem:[#allocation2 + $0x24] sm:$0xf0] }
  0x19   :  { %889 = vmatpush.bf16.msra.mxu3 %v1724_v38  ;;  %v2248_v55 = vld [vmem:[#allocation2 + $0x1b4] sm:$0xf0]  ;;  %v1644_v58 = vor.u32 %v2232_v53, %v1643_v52  ;;  %v1571_v61 = vld [vmem:[#allocation2 + $0xa0] sm:$0xf]  ;;  %v2214_v63 = vld [vmem:[#allocation2 + $0xa4] sm:$0xf0]  ;;  %v1508_v4 = vor.u32 %v2198_v60, %v1507_v59 }
  0x1a   :  { %851 = vmatpush.bf16.msra.mxu0 %v1524_v44  ;;  %v1708_v62 = vor.u32 %v2248_v55, %v1707_v54  ;;  %v1635_v0 = vld [vmem:[#allocation2 + $0x120] sm:$0xf]  ;;  %v2230_v1 = vld [vmem:[#allocation2 + $0x124] sm:$0xf0]  ;;  %v1572_v5 = vor.u32 %v2214_v63, %v1571_v61  ;;  %v1499_v7 = vld [vmem:[#allocation2 + $0x10] sm:$0xf] }
  0x1b   :  { %864 = vmatpush.bf16.msra.mxu1 %v1588_v45  ;;  %v1699_v2 = vld [vmem:[#allocation2 + $0x1a0] sm:$0xf]  ;;  %v2246_v3 = vld [vmem:[#allocation2 + $0x1a4] sm:$0xf0]  ;;  %v1636_v6 = vor.u32 %v2230_v1, %v1635_v0  ;;  %v2196_v8 = vld [vmem:[#allocation2 + $0x14] sm:$0xf0] }
  0x1c   :  { %877 = vmatpush.bf16.msra.mxu2 %v1652_v46  ;;  %v1563_v9 = vld [vmem:[#allocation2 + $0x90] sm:$0xf]  ;;  %v1700_v10 = vor.u32 %v2246_v3, %v1699_v2  ;;  %v2212_v11 = vld [vmem:[#allocation2 + $0x94] sm:$0xf0]  ;;  %v1500_v16 = vor.u32 %v2196_v8, %v1499_v7  ;;  %v1491_v17 = vld [vmem:[#allocation2] sm:$0xf] }
  0x1d   :  { %890 = vmatpush.bf16.msra.mxu3 %v1716_v50  ;;  %v1627_v12 = vld [vmem:[#allocation2 + $0x110] sm:$0xf]  ;;  %v2228_v13 = vld [vmem:[#allocation2 + $0x114] sm:$0xf0]  ;;  %v2194_v18 = vld [vmem:[#allocation2 + $0x4] sm:$0xf0]  ;;  %v1564_v19 = vor.u32 %v2212_v11, %v1563_v9 }
  0x1e   :  { %852 = vmatpush.bf16.msra.mxu0 %v1516_v56  ;;  %v1691_v14 = vld [vmem:[#allocation2 + $0x190] sm:$0xf]  ;;  %v2244_v15 = vld [vmem:[#allocation2 + $0x194] sm:$0xf0]  ;;  %v1628_v20 = vor.u32 %v2228_v13, %v1627_v12  ;;  %v1555_v21 = vld [vmem:[#allocation2 + $0x80] sm:$0xf]  ;;  %v1492_v31 = vor.u32 %v2194_v18, %v1491_v17 }
  0x1f   :  { %865 = vmatpush.bf16.msra.mxu1 %v1580_v57  ;;  %v2210_v22 = vld [vmem:[#allocation2 + $0x84] sm:$0xf0]  ;;  %v1619_v23 = vld [vmem:[#allocation2 + $0x100] sm:$0xf]  ;;  %v1692_v24 = vor.u32 %v2244_v15, %v1691_v14  ;;  %v1803_v28 = vld [vmem:[#allocation2 + $0x270] sm:$0xf] }
  0x20   :  { %878 = vmatpush.bf16.msra.mxu2 %v1644_v58  ;;  %v2226_v25 = vld [vmem:[#allocation2 + $0x104] sm:$0xf0]  ;;  %v1683_v26 = vld [vmem:[#allocation2 + $0x180] sm:$0xf]  ;;  %v2272_v29 = vld [vmem:[#allocation2 + $0x274] sm:$0xf0]  ;;  %v1556_v35 = vor.u32 %v2210_v22, %v1555_v21 }
  0x21   :  { %891 = vmatpush.bf16.msra.mxu3 %v1708_v62  ;;  %v2242_v27 = vld [vmem:[#allocation2 + $0x184] sm:$0xf0]  ;;  %v1867_v30 = vld [vmem:[#allocation2 + $0x2f0] sm:$0xf]  ;;  %v2288_v32 = vld [vmem:[#allocation2 + $0x2f4] sm:$0xf0]  ;;  %v1620_v36 = vor.u32 %v2226_v25, %v1619_v23  ;;  %v1804_v40 = vor.u32 %v2272_v29, %v1803_v28 }
  0x22   :  { %853 = vmatpush.bf16.msra.mxu0 %v1508_v4  ;;  %v1931_v33 = vld [vmem:[#allocation2 + $0x370] sm:$0xf]  ;;  %v2304_v34 = vld [vmem:[#allocation2 + $0x374] sm:$0xf0]  ;;  %v1684_v39 = vor.u32 %v2242_v27, %v1683_v26  ;;  %v1868_v41 = vor.u32 %v2288_v32, %v1867_v30  ;;  %v1795_v43 = vld [vmem:[#allocation2 + $0x260] sm:$0xf] }
  0x23   :  { %866 = vmatpush.bf16.msra.mxu1 %v1572_v5  ;;  %v1995_v37 = vld [vmem:[#allocation2 + $0x3f0] sm:$0xf]  ;;  %v2320_v38 = vld [vmem:[#allocation2 + $0x3f4] sm:$0xf0]  ;;  %v1932_v42 = vor.u32 %v2304_v34, %v1931_v33  ;;  %v2270_v44 = vld [vmem:[#allocation2 + $0x264] sm:$0xf0] }
  0x24   :  { %879 = vmatpush.bf16.msra.mxu2 %v1636_v6  ;;  %v1859_v45 = vld [vmem:[#allocation2 + $0x2e0] sm:$0xf]  ;;  %v1996_v46 = vor.u32 %v2320_v38, %v1995_v37  ;;  %v2286_v47 = vld [vmem:[#allocation2 + $0x2e4] sm:$0xf0]  ;;  %v60_v52 = vld [vmem:[%s2600_s0 + $0x10] sm:$0xff]  ;;  %v1796_v53 = vor.u32 %v2270_v44, %v1795_v43 }
  0x25   :  { %892 = vmatpush.bf16.msra.mxu3 %v1700_v10  ;;  %v1923_v48 = vld [vmem:[#allocation2 + $0x360] sm:$0xf]  ;;  %v2302_v49 = vld [vmem:[#allocation2 + $0x364] sm:$0xf0]  ;;  %v1787_v54 = vld [vmem:[#allocation2 + $0x250] sm:$0xf]  ;;  %v2483_v57 = vpack.c.bf16 %v60_v52, %v60_v52  ;;  %v1860_v58 = vor.u32 %v2286_v47, %v1859_v45 }
  0x26   :  { %854 = vmatpush.bf16.msra.mxu0 %v1500_v16  ;;  %v1987_v50 = vld [vmem:[#allocation2 + $0x3e0] sm:$0xf]  ;;  %v2318_v51 = vld [vmem:[#allocation2 + $0x3e4] sm:$0xf0]  ;;  %v2268_v55 = vld [vmem:[#allocation2 + $0x254] sm:$0xf0]  ;;  %v1924_v59 = vor.u32 %v2302_v49, %v1923_v48 }
  0x27   :  { %867 = vmatpush.bf16.msra.mxu1 %v1564_v19  ;;  %v1851_v56 = vld [vmem:[#allocation2 + $0x2d0] sm:$0xf]  ;;  %v2284_v60 = vld [vmem:[#allocation2 + $0x2d4] sm:$0xf0]  ;;  %v1988_v63 = vor.u32 %v2318_v51, %v1987_v50  ;;  %v58_v0 = vld [vmem:[%s2600_s0] sm:$0xff]  ;;  %v1788_v8 = vor.u32 %v2268_v55, %v1787_v54 }
  0x28   :  { %880 = vmatpush.bf16.msra.mxu2 %v1628_v20  ;;  %v1915_v61 = vld [vmem:[#allocation2 + $0x350] sm:$0xf]  ;;  %v2300_v62 = vld [vmem:[#allocation2 + $0x354] sm:$0xf0]  ;;  %v59_v2 = vld [vmem:[%s2600_s0 + $0x8] sm:$0xff]  ;;  %v2495_v5 = vpack.c.bf16 %v58_v0, %v58_v0  ;;  %v1852_v9 = vor.u32 %v2284_v60, %v1851_v56 }
  0x29   :  { %893 = vmatpush.bf16.msra.mxu3 %v1692_v24  ;;  %v61_v1 = vld [vmem:[%s2600_s0 + $0x18] sm:$0xff]  ;;  %v1979_v3 = vld [vmem:[#allocation2 + $0x3d0] sm:$0xf]  ;;  %v2499_v7 = vpack.c.bf16 %v59_v2, %v59_v2  ;;  %v1916_v10 = vor.u32 %v2300_v62, %v1915_v61  ;;  %v1779_v11 = vld [vmem:[#allocation2 + $0x240] sm:$0xf] }
  0x2a   :  { %855 = vmatpush.bf16.msra.mxu0 %v1492_v31  ;;  %v2316_v4 = vld [vmem:[#allocation2 + $0x3d4] sm:$0xf0]  ;;  %v2497_v6 = vpack.c.bf16 %v61_v1, %v61_v1  ;;  %v2266_v12 = vld [vmem:[#allocation2 + $0x244] sm:$0xf0]  ;;  %v1843_v13 = vld [vmem:[#allocation2 + $0x2c0] sm:$0xf] }
  0x2b   :  { %868 = vmatpush.bf16.msra.mxu1 %v1556_v35  ;;  %v1980_v14 = vor.u32 %v2316_v4, %v1979_v3  ;;  %v2282_v15 = vld [vmem:[#allocation2 + $0x2c4] sm:$0xf0]  ;;  %v1907_v16 = vld [vmem:[#allocation2 + $0x340] sm:$0xf]  ;;  %v1780_v20 = vor.u32 %v2266_v12, %v1779_v11  ;;  %v1771_v23 = vld [vmem:[#allocation2 + $0x230] sm:$0xf] }
  0x2c   :  { %881 = vmatpush.bf16.msra.mxu2 %v1620_v36  ;;  %v2298_v17 = vld [vmem:[#allocation2 + $0x344] sm:$0xf0]  ;;  %v1971_v18 = vld [vmem:[#allocation2 + $0x3c0] sm:$0xf]  ;;  %v1844_v21 = vor.u32 %v2282_v15, %v1843_v13  ;;  %v2264_v24 = vld [vmem:[#allocation2 + $0x234] sm:$0xf0] }
  0x2d   :  { %894 = vmatpush.bf16.msra.mxu3 %v1684_v39  ;;  %856 = vmatmul.bf16.vlgmr.msra.gmra.mxu0 %v2495_v5  ;;  %v2314_v19 = vld [vmem:[#allocation2 + $0x3c4] sm:$0xf0]  ;;  %v1908_v22 = vor.u32 %v2298_v17, %v1907_v16  ;;  %v1835_v25 = vld [vmem:[#allocation2 + $0x2b0] sm:$0xf]  ;;  %v2280_v27 = vld [vmem:[#allocation2 + $0x2b4] sm:$0xf0]  ;;  %v1772_v32 = vor.u32 %v2264_v24, %v1771_v23 }
  0x2e   :  { %900 = vmatpush.bf16.msrb.mxu0 %v1804_v40  ;;  %869 = vmatmul.bf16.vlgmr.msra.gmra.mxu1 %v2499_v7  ;;  %v1972_v26 = vor.u32 %v2314_v19, %v1971_v18  ;;  %v1899_v28 = vld [vmem:[#allocation2 + $0x330] sm:$0xf]  ;;  %v2296_v29 = vld [vmem:[#allocation2 + $0x334] sm:$0xf0]  ;;  %v1836_v33 = vor.u32 %v2280_v27, %v1835_v25  ;;  %v1763_v35 = vld [vmem:[#allocation2 + $0x220] sm:$0xf] }
  0x2f   :  { %913 = vmatpush.bf16.msrb.mxu1 %v1868_v41  ;;  %882 = vmatmul.bf16.vlgmr.msra.gmra.mxu2 %v2483_v57  ;;  %v1963_v30 = vld [vmem:[#allocation2 + $0x3b0] sm:$0xf]  ;;  %v2312_v31 = vld [vmem:[#allocation2 + $0x3b4] sm:$0xf0]  ;;  %v1900_v34 = vor.u32 %v2296_v29, %v1899_v28  ;;  %v2262_v36 = vld [vmem:[#allocation2 + $0x224] sm:$0xf0] }
  0x30   :  { %926 = vmatpush.bf16.msrb.mxu2 %v1932_v42  ;;  %895 = vmatmul.bf16.vlgmr.msra.gmra.mxu3 %v2497_v6  ;;  %v1827_v37 = vld [vmem:[#allocation2 + $0x2a0] sm:$0xf]  ;;  %v1964_v38 = vor.u32 %v2312_v31, %v1963_v30  ;;  %v2278_v39 = vld [vmem:[#allocation2 + $0x2a4] sm:$0xf0]  ;;  %v1764_v44 = vor.u32 %v2262_v36, %v1763_v35  ;;  %v1755_v47 = vld [vmem:[#allocation2 + $0x210] sm:$0xf] }
  0x31   :  { %939 = vmatpush.bf16.msrb.mxu3 %v1996_v46  ;;  %v1891_v40 = vld [vmem:[#allocation2 + $0x320] sm:$0xf]  ;;  %v2294_v41 = vld [vmem:[#allocation2 + $0x324] sm:$0xf0]  ;;  %v1828_v45 = vor.u32 %v2278_v39, %v1827_v37  ;;  %v2260_v48 = vld [vmem:[#allocation2 + $0x214] sm:$0xf0] }
  0x32   :  { %901 = vmatpush.bf16.msrb.mxu0 %v1796_v53  ;;  %v1955_v42 = vld [vmem:[#allocation2 + $0x3a0] sm:$0xf]  ;;  %v2310_v43 = vld [vmem:[#allocation2 + $0x3a4] sm:$0xf0]  ;;  %v1892_v46 = vor.u32 %v2294_v41, %v1891_v40  ;;  %v1819_v49 = vld [vmem:[#allocation2 + $0x290] sm:$0xf]  ;;  %v1756_v56 = vor.u32 %v2260_v48, %v1755_v47 }
  0x33   :  { %914 = vmatpush.bf16.msrb.mxu1 %v1860_v58  ;;  %v1956_v50 = vor.u32 %v2310_v43, %v1955_v42  ;;  %v2276_v51 = vld [vmem:[#allocation2 + $0x294] sm:$0xf0]  ;;  %v1883_v52 = vld [vmem:[#allocation2 + $0x310] sm:$0xf]  ;;  %v1747_v58 = vld [vmem:[#allocation2 + $0x200] sm:$0xf] }
  0x34   :  { %927 = vmatpush.bf16.msrb.mxu2 %v1924_v59  ;;  %v2292_v53 = vld [vmem:[#allocation2 + $0x314] sm:$0xf0]  ;;  %v1947_v54 = vld [vmem:[#allocation2 + $0x390] sm:$0xf]  ;;  %v2258_v59 = vld [vmem:[#allocation2 + $0x204] sm:$0xf0]  ;;  %v1820_v60 = vor.u32 %v2276_v51, %v1819_v49 }
  0x35   :  { %940 = vmatpush.bf16.msrb.mxu3 %v1988_v63  ;;  %v2308_v55 = vld [vmem:[#allocation2 + $0x394] sm:$0xf0]  ;;  %v1884_v61 = vor.u32 %v2292_v53, %v1883_v52  ;;  %v1811_v62 = vld [vmem:[#allocation2 + $0x280] sm:$0xf]  ;;  %v2274_v63 = vld [vmem:[#allocation2 + $0x284] sm:$0xf0]  ;;  %v1748_v11 = vor.u32 %v2258_v59, %v1747_v58 }
  0x36   :  { %902 = vmatpush.bf16.msrb.mxu0 %v1788_v8  ;;  %v1875_v0 = vld [vmem:[#allocation2 + $0x300] sm:$0xf]  ;;  %v1948_v1 = vor.u32 %v2308_v55, %v1947_v54  ;;  %v2290_v2 = vld [vmem:[#allocation2 + $0x304] sm:$0xf0]  ;;  %v2207_v8 = vld [vmem:[#allocation2 + $0x74] sm:$0xf]  ;;  %v1812_v15 = vor.u32 %v2274_v63, %v1811_v62 }
  0x37   :  { %915 = vmatpush.bf16.msrb.mxu1 %v1852_v9  ;;  %v1939_v3 = vld [vmem:[#allocation2 + $0x380] sm:$0xf]  ;;  %v2306_v4 = vld [vmem:[#allocation2 + $0x384] sm:$0xf0]  ;;  %v1549_v9 = vld [vmem:[#allocation2 + $0x78] sm:$0xf0]  ;;  %v1876_v16 = vor.u32 %v2290_v2, %v1875_v0 }
  0x38   :  { %928 = vmatpush.bf16.msrb.mxu2 %v1916_v10  ;;  %v2223_v10 = vld [vmem:[#allocation2 + $0xf4] sm:$0xf]  ;;  %v1613_v12 = vld [vmem:[#allocation2 + $0xf8] sm:$0xf0]  ;;  %v2205_v24 = vld [vmem:[#allocation2 + $0x64] sm:$0xf] }
  0x39   :  { %941 = vmatpush.bf16.msrb.mxu3 %v1980_v14  ;;  %v2239_v13 = vld [vmem:[#allocation2 + $0x174] sm:$0xf]  ;;  %v1677_v14 = vld [vmem:[#allocation2 + $0x178] sm:$0xf0]  ;;  %v1616_v25 = vor.u32 %v2223_v10, %v1613_v12  ;;  %v1541_v27 = vld [vmem:[#allocation2 + $0x68] sm:$0xf0] }
  0x3a   :  { %903 = vmatpush.bf16.msrb.mxu0 %v1780_v20  ;;  %v2255_v17 = vld [vmem:[#allocation2 + $0x1f4] sm:$0xf]  ;;  %v1741_v18 = vld [vmem:[#allocation2 + $0x1f8] sm:$0xf0]  ;;  %v1940_v20 = vor.u32 %v2306_v4, %v1939_v3  ;;  %v2221_v28 = vld [vmem:[#allocation2 + $0xe4] sm:$0xf]  ;;  %v1544_v39 = vor.u32 %v2205_v24, %v1541_v27 }
  0x3b   :  { %916 = vmatpush.bf16.msrb.mxu1 %v1844_v21  ;;  %v64_v19 = vld [vmem:[%s2600_s0 + $0x30] sm:$0xff]  ;;  %v1552_v21 = vor.u32 %v2207_v8, %v1549_v9  ;;  %v65_v23 = vld [vmem:[%s2600_s0 + $0x38] sm:$0xff]  ;;  %v63_v29 = vld [vmem:[%s2600_s0 + $0x28] sm:$0xff]  ;;  %v1744_v30 = vor.u32 %v2255_v17, %v1741_v18 }
  0x3c   :  { %929 = vmatpush.bf16.msrb.mxu2 %v1908_v22  ;;  %v62_v22 = vld [vmem:[%s2600_s0 + $0x20] sm:$0xff]  ;;  %v2516_v31 = vpack.c.bf16 %v64_v19, %v64_v19  ;;  %v2520_v36 = vpack.c.bf16 %v65_v23, %v65_v23  ;;  %v2522_v40 = vpack.c.bf16 %v63_v29, %v63_v29  ;;  %v2203_v43 = vld [vmem:[#allocation2 + $0x54] sm:$0xf]  ;;  %v1597_v47 = vld [vmem:[#allocation2 + $0xd8] sm:$0xf0] }
  0x3d   :  { %942 = vmatpush.bf16.msrb.mxu3 %v1972_v26  ;;  %v1680_v26 = vor.u32 %v2239_v13, %v1677_v14  ;;  %v2518_v35 = vpack.c.bf16 %v62_v22, %v62_v22  ;;  %v2253_v37 = vld [vmem:[#allocation2 + $0x1e4] sm:$0xf]  ;;  %v2235_v48 = vld [vmem:[#allocation2 + $0x154] sm:$0xf]  ;;  %v1661_v49 = vld [vmem:[#allocation2 + $0x158] sm:$0xf0] }
  0x3e   :  { %904 = vmatpush.bf16.msrb.mxu0 %v1772_v32  ;;  %v1605_v32 = vld [vmem:[#allocation2 + $0xe8] sm:$0xf0]  ;;  %v1725_v51 = vld [vmem:[#allocation2 + $0x1d8] sm:$0xf0]  ;;  %v1664_v54 = vor.u32 %v2235_v48, %v1661_v49  ;;  %v2201_v55 = vld [vmem:[#allocation2 + $0x44] sm:$0xf] }
  0x3f   :  { %917 = vmatpush.bf16.msrb.mxu1 %v1836_v33  ;;  %v2237_v33 = vld [vmem:[#allocation2 + $0x164] sm:$0xf]  ;;  %v1608_v41 = vor.u32 %v2221_v28, %v1605_v32  ;;  %v1653_v62 = vld [vmem:[#allocation2 + $0x148] sm:$0xf0]  ;;  %v2199_v4 = vld [vmem:[#allocation2 + $0x34] sm:$0xf] }
  0x40   :  { %930 = vmatpush.bf16.msrb.mxu2 %v1900_v34  ;;  %v1669_v34 = vld [vmem:[#allocation2 + $0x168] sm:$0xf0]  ;;  %v2217_v58 = vld [vmem:[#allocation2 + $0xc4] sm:$0xf]  ;;  %v1517_v8 = vld [vmem:[#allocation2 + $0x38] sm:$0xf0] }
  0x41   :  { %943 = vmatpush.bf16.msrb.mxu3 %v1964_v38  ;;  %v1733_v38 = vld [vmem:[#allocation2 + $0x1e8] sm:$0xf0]  ;;  %v1672_v42 = vor.u32 %v2237_v33, %v1669_v34  ;;  %v2249_v63 = vld [vmem:[#allocation2 + $0x1c4] sm:$0xf]  ;;  %v2215_v9 = vld [vmem:[#allocation2 + $0xb4] sm:$0xf] }
  0x42   :  { %905 = vmatpush.bf16.msrb.mxu0 %v1764_v44  ;;  %v1533_v44 = vld [vmem:[#allocation2 + $0x58] sm:$0xf0]  ;;  %v1717_v0 = vld [vmem:[#allocation2 + $0x1c8] sm:$0xf0]  ;;  %v2231_v12 = vld [vmem:[#allocation2 + $0x134] sm:$0xf] }
  0x43   :  { %918 = vmatpush.bf16.msrb.mxu1 %v1828_v45  ;;  %v2219_v45 = vld [vmem:[#allocation2 + $0xd4] sm:$0xf]  ;;  %v1536_v52 = vor.u32 %v2203_v43, %v1533_v44  ;;  %v1720_v10 = vor.u32 %v2249_v63, %v1717_v0  ;;  %v1645_v13 = vld [vmem:[#allocation2 + $0x138] sm:$0xf0]  ;;  %v2197_v19 = vld [vmem:[#allocation2 + $0x24] sm:$0xf] }
  0x44   :  { %931 = vmatpush.bf16.msrb.mxu2 %v1892_v46  ;;  %v1736_v46 = vor.u32 %v2253_v37, %v1733_v38  ;;  %v1600_v53 = vor.u32 %v2219_v45, %v1597_v47  ;;  %v2247_v14 = vld [vmem:[#allocation2 + $0x1b4] sm:$0xf]  ;;  %v1648_v18 = vor.u32 %v2231_v12, %v1645_v13  ;;  %v1573_v23 = vld [vmem:[#allocation2 + $0xa8] sm:$0xf0]  ;;  %v2229_v24 = vld [vmem:[#allocation2 + $0x124] sm:$0xf] }
  0x45   :  { %944 = vmatpush.bf16.msrb.mxu3 %v1956_v50  ;;  %v2251_v50 = vld [vmem:[#allocation2 + $0x1d4] sm:$0xf]  ;;  %v1701_v27 = vld [vmem:[#allocation2 + $0x1a8] sm:$0xf0]  ;;  %v1501_v33 = vld [vmem:[#allocation2 + $0x18] sm:$0xf0] }
  0x46   :  { %906 = vmatpush.bf16.msrb.mxu0 %v1756_v56  ;;  %v1525_v56 = vld [vmem:[#allocation2 + $0x48] sm:$0xf0]  ;;  %v1728_v59 = vor.u32 %v2251_v50, %v1725_v51  ;;  %v2195_v32 = vld [vmem:[#allocation2 + $0x14] sm:$0xf]  ;;  %v1565_v38 = vld [vmem:[#allocation2 + $0x98] sm:$0xf0] }
  0x47   :  { %919 = vmatpush.bf16.msrb.mxu1 %v1820_v60  ;;  %v1589_v60 = vld [vmem:[#allocation2 + $0xc8] sm:$0xf0]  ;;  %v2211_v34 = vld [vmem:[#allocation2 + $0x94] sm:$0xf]  ;;  %v1693_v43 = vld [vmem:[#allocation2 + $0x198] sm:$0xf0]  ;;  %v1504_v44 = vor.u32 %v2195_v32, %v1501_v33 }
  0x48   :  { %932 = vmatpush.bf16.msrb.mxu2 %v1884_v61  ;;  %v2233_v61 = vld [vmem:[#allocation2 + $0x144] sm:$0xf]  ;;  %v1592_v2 = vor.u32 %v2217_v58, %v1589_v60  ;;  %v1568_v47 = vor.u32 %v2211_v34, %v1565_v38  ;;  %v1557_v50 = vld [vmem:[#allocation2 + $0x88] sm:$0xf0]  ;;  %v1805_v58 = vld [vmem:[#allocation2 + $0x278] sm:$0xf0] }
  0x49   :  { %945 = vmatpush.bf16.msrb.mxu3 %v1948_v1  ;;  %v1528_v1 = vor.u32 %v2201_v55, %v1525_v56  ;;  %v1656_v3 = vor.u32 %v2233_v61, %v1653_v62  ;;  %v2193_v45 = vld [vmem:[#allocation2 + $0x4] sm:$0xf]  ;;  %v1685_v55 = vld [vmem:[#allocation2 + $0x188] sm:$0xf0]  ;;  %v2271_v56 = vld [vmem:[#allocation2 + $0x274] sm:$0xf] }
  0x4a   :  { %907 = vmatpush.bf16.msrb.mxu0 %v1748_v11  ;;  %v1581_v11 = vld [vmem:[#allocation2 + $0xb8] sm:$0xf0]  ;;  %v2209_v49 = vld [vmem:[#allocation2 + $0x84] sm:$0xf]  ;;  %v2303_v62 = vld [vmem:[#allocation2 + $0x374] sm:$0xf] }
  0x4b   :  { %920 = vmatpush.bf16.msrb.mxu1 %v1812_v15  ;;  %v1709_v15 = vld [vmem:[#allocation2 + $0x1b8] sm:$0xf0]  ;;  %v1584_v17 = vor.u32 %v2215_v9, %v1581_v11  ;;  %v2225_v51 = vld [vmem:[#allocation2 + $0x104] sm:$0xf]  ;;  %v1560_v0 = vor.u32 %v2209_v49, %v1557_v50  ;;  %v1797_v12 = vld [vmem:[#allocation2 + $0x268] sm:$0xf0] }
  0x4c   :  { %933 = vmatpush.bf16.msrb.mxu2 %v1876_v16  ;;  %v1520_v16 = vor.u32 %v2199_v4, %v1517_v8  ;;  %v1712_v22 = vor.u32 %v2247_v14, %v1709_v15  ;;  %v1869_v61 = vld [vmem:[#allocation2 + $0x2f8] sm:$0xf0]  ;;  %v1808_v8 = vor.u32 %v2271_v56, %v1805_v58  ;;  %v2269_v11 = vld [vmem:[#allocation2 + $0x264] sm:$0xf]  ;;  %v1861_v15 = vld [vmem:[#allocation2 + $0x2e8] sm:$0xf0] }
  0x4d   :  { %946 = vmatpush.bf16.msrb.mxu3 %v1940_v20  ;;  %908 = vmatmul.bf16.vlgmr.msrb.gmra.mxu0 %v2518_v35  ;;  %v1509_v20 = vld [vmem:[#allocation2 + $0x28] sm:$0xf0]  ;;  %v1933_v63 = vld [vmem:[#allocation2 + $0x378] sm:$0xf0]  ;;  %v2285_v13 = vld [vmem:[#allocation2 + $0x2e4] sm:$0xf] }
  0x4e   :  { %952 = vmatpush.bf16.msra.mxu0 %v1552_v21  ;;  %921 = vmatmul.bf16.vlgmr.msrb.gmra.mxu1 %v2522_v40  ;;  %v2213_v21 = vld [vmem:[#allocation2 + $0xa4] sm:$0xf]  ;;  %v1512_v28 = vor.u32 %v2197_v19, %v1509_v20  ;;  %v1989_v19 = vld [vmem:[#allocation2 + $0x3e8] sm:$0xf0]  ;;  %v1800_v20 = vor.u32 %v2269_v11, %v1797_v12  ;;  %v1981_v32 = vld [vmem:[#allocation2 + $0x3d8] sm:$0xf0] }
  0x4f   :  { %965 = vmatpush.bf16.msra.mxu1 %v1616_v25  ;;  %934 = vmatmul.bf16.vlgmr.msrb.gmra.mxu2 %v2516_v31  ;;  %v1637_v25 = vld [vmem:[#allocation2 + $0x128] sm:$0xf0]  ;;  %v1576_v29 = vor.u32 %v2213_v21, %v1573_v23  ;;  %v1864_v21 = vor.u32 %v2285_v13, %v1861_v15  ;;  %v2267_v23 = vld [vmem:[#allocation2 + $0x254] sm:$0xf]  ;;  %v2265_v38 = vld [vmem:[#allocation2 + $0x244] sm:$0xf] }
  0x50   :  { %978 = vmatpush.bf16.msra.mxu2 %v1680_v26  ;;  %947 = vmatmul.bf16.vlgmr.msrb.gmra.mxu3 %v2520_v36  ;;  %v2245_v26 = vld [vmem:[#allocation2 + $0x1a4] sm:$0xf]  ;;  %v2279_v49 = vld [vmem:[#allocation2 + $0x2b4] sm:$0xf]  ;;  %v1757_v12 = vld [vmem:[#allocation2 + $0x218] sm:$0xf0] }
  0x51   :  { %991 = vmatpush.bf16.msra.mxu3 %v1744_v30  ;;  %v1640_v30 = vor.u32 %v2229_v24, %v1637_v25  ;;  %v1704_v37 = vor.u32 %v2245_v26, %v1701_v27  ;;  %v1789_v24 = vld [vmem:[#allocation2 + $0x258] sm:$0xf0]  ;;  %v2283_v25 = vld [vmem:[#allocation2 + $0x2d4] sm:$0xf] }
  0x52   :  { %953 = vmatpush.bf16.msra.mxu0 %v1544_v39  ;;  %v2227_v39 = vld [vmem:[#allocation2 + $0x114] sm:$0xf]  ;;  %v1853_v27 = vld [vmem:[#allocation2 + $0x2d8] sm:$0xf0]  ;;  %v1792_v33 = vor.u32 %v2267_v23, %v1789_v24  ;;  %v1749_v24 = vld [vmem:[#allocation2 + $0x208] sm:$0xf0] }
  0x53   :  { %966 = vmatpush.bf16.msra.mxu1 %v1608_v41  ;;  %v1629_v41 = vld [vmem:[#allocation2 + $0x118] sm:$0xf0]  ;;  %v1856_v34 = vor.u32 %v2283_v25, %v1853_v27  ;;  %v2259_v11 = vld [vmem:[#allocation2 + $0x214] sm:$0xf]  ;;  %v2273_v25 = vld [vmem:[#allocation2 + $0x284] sm:$0xf] }
  0x54   :  { %979 = vmatpush.bf16.msra.mxu2 %v1672_v42  ;;  %v2243_v42 = vld [vmem:[#allocation2 + $0x194] sm:$0xf]  ;;  %v1632_v48 = vor.u32 %v2227_v39, %v1629_v41  ;;  %v1781_v39 = vld [vmem:[#allocation2 + $0x248] sm:$0xf0]  ;;  %v1821_v15 = vld [vmem:[#allocation2 + $0x298] sm:$0xf0] }
  0x55   :  { %992 = vmatpush.bf16.msra.mxu3 %v1736_v46  ;;  %v1493_v46 = vld [vmem:[#allocation2 + $0x8] sm:$0xf0]  ;;  %v2275_v13 = vld [vmem:[#allocation2 + $0x294] sm:$0xf] }
  0x56   :  { %954 = vmatpush.bf16.msra.mxu0 %v1536_v52  ;;  %v1696_v52 = vor.u32 %v2243_v42, %v1693_v43  ;;  %v1496_v60 = vor.u32 %v2193_v45, %v1493_v46  ;;  %v1845_v42 = vld [vmem:[#allocation2 + $0x2c8] sm:$0xf0]  ;;  %v2297_v43 = vld [vmem:[#allocation2 + $0x344] sm:$0xf] }
  0x57   :  { %967 = vmatpush.bf16.msra.mxu1 %v1600_v53  ;;  %v1621_v53 = vld [vmem:[#allocation2 + $0x108] sm:$0xf0]  ;;  %v2313_v45 = vld [vmem:[#allocation2 + $0x3c4] sm:$0xf] }
  0x58   :  { %980 = vmatpush.bf16.msra.mxu2 %v1664_v54  ;;  %v2241_v54 = vld [vmem:[#allocation2 + $0x184] sm:$0xf] }
  0x59   :  { %993 = vmatpush.bf16.msra.mxu3 %v1728_v59  ;;  %v2287_v59 = vld [vmem:[#allocation2 + $0x2f4] sm:$0xf]  ;;  %v1688_v4 = vor.u32 %v2241_v54, %v1685_v55  ;;  %v1965_v55 = vld [vmem:[#allocation2 + $0x3b8] sm:$0xf0] }
  0x5a   :  { %955 = vmatpush.bf16.msra.mxu0 %v1528_v1  ;;  %v1624_v1 = vor.u32 %v2225_v51, %v1621_v53  ;;  %v1872_v9 = vor.u32 %v2287_v59, %v1869_v61  ;;  %v1837_v51 = vld [vmem:[#allocation2 + $0x2b8] sm:$0xf0]  ;;  %v2311_v54 = vld [vmem:[#allocation2 + $0x3b4] sm:$0xf]  ;;  %v1765_v61 = vld [vmem:[#allocation2 + $0x228] sm:$0xf0] }
  0x5b   :  { %968 = vmatpush.bf16.msra.mxu1 %v1592_v2  ;;  %v2319_v2 = vld [vmem:[#allocation2 + $0x3f4] sm:$0xf]  ;;  %v1901_v53 = vld [vmem:[#allocation2 + $0x338] sm:$0xf0]  ;;  %v1840_v58 = vor.u32 %v2279_v49, %v1837_v51  ;;  %v2332_v49 = vld [vmem:[#allocation4 + $0x54] sm:$0xf0] }
  0x5c   :  { %981 = vmatpush.bf16.msra.mxu2 %v1656_v3  ;;  %v1997_v3 = vld [vmem:[#allocation2 + $0x3f8] sm:$0xf0] }
  0x5d   :  { %994 = vmatpush.bf16.msra.mxu3 %v1720_v10  ;;  %v1936_v10 = vor.u32 %v2303_v62, %v1933_v63  ;;  %v2000_v14 = vor.u32 %v2319_v2, %v1997_v3  ;;  %v2277_v62 = vld [vmem:[#allocation2 + $0x2a4] sm:$0xf]  ;;  %v1968_v63 = vor.u32 %v2311_v54, %v1965_v55  ;;  %v1893_v2 = vld [vmem:[#allocation2 + $0x328] sm:$0xf0] }
  0x5e   :  { %956 = vmatpush.bf16.msra.mxu0 %v1520_v16  ;;  %v2301_v16 = vld [vmem:[#allocation2 + $0x364] sm:$0xf] }
  0x5f   :  { %969 = vmatpush.bf16.msra.mxu1 %v1584_v17  ;;  %v1925_v17 = vld [vmem:[#allocation2 + $0x368] sm:$0xf0]  ;;  %v2309_v3 = vld [vmem:[#allocation2 + $0x3a4] sm:$0xf] }
  0x60   :  { %982 = vmatpush.bf16.msra.mxu2 %v1648_v18  ;;  %v2317_v18 = vld [vmem:[#allocation2 + $0x3e4] sm:$0xf] }
  0x61   :  { %995 = vmatpush.bf16.msra.mxu3 %v1712_v22  ;;  %v1928_v22 = vor.u32 %v2301_v16, %v1925_v17  ;;  %v1992_v26 = vor.u32 %v2317_v18, %v1989_v19  ;;  %v2291_v16 = vld [vmem:[#allocation2 + $0x314] sm:$0xf]  ;;  %v1885_v17 = vld [vmem:[#allocation2 + $0x318] sm:$0xf0]  ;;  %v2329_v54 = vld [vmem:[#allocation4 + $0x44] sm:$0xf] }
  0x62   :  { %957 = vmatpush.bf16.msra.mxu0 %v1512_v28  ;;  %v2299_v28 = vld [vmem:[#allocation2 + $0x354] sm:$0xf]  ;;  %v1949_v19 = vld [vmem:[#allocation2 + $0x398] sm:$0xf0]  ;;  %v1888_v23 = vor.u32 %v2291_v16, %v1885_v17  ;;  %v2539_v17 = vld [vmem:[%s2602_s2] sm:$0x3] }
  0x63   :  { %970 = vmatpush.bf16.msra.mxu1 %v1576_v29  ;;  %v1917_v29 = vld [vmem:[#allocation2 + $0x358] sm:$0xf0]  ;;  %v2307_v18 = vld [vmem:[#allocation2 + $0x394] sm:$0xf] }
  0x64   :  { %983 = vmatpush.bf16.msra.mxu2 %v1640_v30  ;;  %v2315_v30 = vld [vmem:[#allocation2 + $0x3d4] sm:$0xf]  ;;  %v1952_v27 = vor.u32 %v2307_v18, %v1949_v19  ;;  %v2003_v18 = vld [vmem:[#allocation4] sm:$0xf]  ;;  %v2322_v19 = vld [vmem:[#allocation4 + $0x4] sm:$0xf0] }
  0x65   :  { %996 = vmatpush.bf16.msra.mxu3 %v1704_v37  ;;  %v1920_v37 = vor.u32 %v2299_v28, %v1917_v29  ;;  %v1984_v41 = vor.u32 %v2315_v30, %v1981_v32  ;;  %v2289_v28 = vld [vmem:[#allocation2 + $0x304] sm:$0xf]  ;;  %v1877_v29 = vld [vmem:[#allocation2 + $0x308] sm:$0xf0] }
  0x66   :  { %958 = vmatpush.bf16.msra.mxu0 %v1504_v44  ;;  %v1909_v44 = vld [vmem:[#allocation2 + $0x348] sm:$0xf0]  ;;  %v2305_v30 = vld [vmem:[#allocation2 + $0x384] sm:$0xf] }
  0x67   :  { %971 = vmatpush.bf16.msra.mxu1 %v1568_v47  ;;  %v2263_v47 = vld [vmem:[#allocation2 + $0x234] sm:$0xf]  ;;  %v1941_v32 = vld [vmem:[#allocation2 + $0x388] sm:$0xf0] }
  0x68   :  { %984 = vmatpush.bf16.msra.mxu2 %v1632_v48  ;;  %v1773_v48 = vld [vmem:[#allocation2 + $0x238] sm:$0xf0] }
  0x69   :  { %997 = vmatpush.bf16.msra.mxu3 %v1696_v52  ;;  %v2295_v52 = vld [vmem:[#allocation2 + $0x334] sm:$0xf]  ;;  %v1776_v56 = vor.u32 %v2263_v47, %v1773_v48  ;;  %v2043_v48 = vld [vmem:[#allocation4 + $0x50] sm:$0xf] }
  0x6a   :  { %959 = vmatpush.bf16.msra.mxu0 %v1496_v60  ;;  %v1904_v59 = vor.u32 %v2295_v52, %v1901_v53  ;;  %v2261_v60 = vld [vmem:[#allocation2 + $0x224] sm:$0xf]  ;;  %v2044_v51 = vor.u32 %v2332_v49, %v2043_v48  ;;  %v2035_v52 = vld [vmem:[#allocation4 + $0x40] sm:$0xf]  ;;  %v2330_v53 = vld [vmem:[#allocation4 + $0x44] sm:$0xf0] }
  0x6b   :  { %972 = vmatpush.bf16.msra.mxu1 %v1560_v0  ;;  %v1829_v0 = vld [vmem:[#allocation2 + $0x2a8] sm:$0xf0] }
  0x6c   :  { %985 = vmatpush.bf16.msra.mxu2 %v1624_v1  ;;  %v2293_v1 = vld [vmem:[#allocation2 + $0x324] sm:$0xf] }
  0x6d   :  { %998 = vmatpush.bf16.msra.mxu3 %v1688_v4  ;;  %960 = vmatmul.bf16.vlgmr.msra.gmra.mxu0 %v2495_v5  ;;  %v1973_v5 = vld [vmem:[#allocation2 + $0x3c8] sm:$0xf0] }
  0x6e   :  { %1004 = vmatpush.bf16.msrb.mxu0 %v1808_v8  ;;  %973 = vmatmul.bf16.vlgmr.msra.gmra.mxu1 %v2499_v7  ;;  %v1912_v7 = vor.u32 %v2297_v43, %v1909_v44  ;;  %v1976_v50 = vor.u32 %v2313_v45, %v1973_v5  ;;  %v1957_v4 = vld [vmem:[#allocation2 + $0x3a8] sm:$0xf0]  ;;  %v1768_v8 = vor.u32 %v2261_v60, %v1765_v61  ;;  %v2051_v45 = vld [vmem:[#allocation4 + $0x60] sm:$0xf]  ;;  %v2334_v5 = vld [vmem:[#allocation4 + $0x64] sm:$0xf0] }
  0x6f   :  { %1017 = vmatpush.bf16.msrb.mxu1 %v1872_v9  ;;  %986 = vmatmul.bf16.vlgmr.msra.gmra.mxu2 %v2483_v57  ;;  %v2281_v57 = vld [vmem:[#allocation2 + $0x2c4] sm:$0xf]  ;;  %v1832_v9 = vor.u32 %v2277_v62, %v1829_v0  ;;  %v2029_v61 = vld [vmem:[#allocation4 + $0x38] sm:$0xf0]  ;;  %v2326_v0 = vld [vmem:[#allocation4 + $0x24] sm:$0xf0] }
  0x70   :  { %1030 = vmatpush.bf16.msrb.mxu2 %v1936_v10  ;;  %999 = vmatmul.bf16.vlgmr.msra.gmra.mxu3 %v2497_v6  ;;  %v1784_v6 = vor.u32 %v2265_v38, %v1781_v39  ;;  %v1848_v46 = vor.u32 %v2281_v57, %v1845_v42  ;;  %v1896_v10 = vor.u32 %v2293_v1, %v1893_v2  ;;  %v2335_v38 = vld [vmem:[#allocation4 + $0x74] sm:$0xf]  ;;  %v2061_v39 = vld [vmem:[#allocation4 + $0x78] sm:$0xf0]  ;;  %v2325_v1 = vld [vmem:[#allocation4 + $0x24] sm:$0xf] }
  0x71   :  { %1043 = vmatpush.bf16.msrb.mxu3 %v2000_v14  ;;  %v1960_v14 = vor.u32 %v2309_v3, %v1957_v4  ;;  %v1944_v42 = vor.u32 %v2305_v30, %v1941_v32  ;;  %v2064_v44 = vor.u32 %v2335_v38, %v2061_v39  ;;  %v2021_v3 = vld [vmem:[#allocation4 + $0x28] sm:$0xf0] }
  0x72   :  { %1005 = vmatpush.bf16.msrb.mxu0 %v1800_v20  ;;  %v1760_v20 = vor.u32 %v2259_v11, %v1757_v12  ;;  %v2011_v11 = vld [vmem:[#allocation4 + $0x10] sm:$0xf]  ;;  %v2324_v12 = vld [vmem:[#allocation4 + $0x14] sm:$0xf0] }
  0x73   :  { %1018 = vmatpush.bf16.msrb.mxu1 %v1864_v21  ;;  %v2257_v21 = vld [vmem:[#allocation2 + $0x204] sm:$0xf] }
  0x74   :  { %1031 = vmatpush.bf16.msrb.mxu2 %v1928_v22  ;;  %v1824_v22 = vor.u32 %v2275_v13, %v1821_v15  ;;  %v2323_v13 = vld [vmem:[#allocation4 + $0x14] sm:$0xf]  ;;  %v2013_v15 = vld [vmem:[#allocation4 + $0x18] sm:$0xf0] }
  0x75   :  { %1044 = vmatpush.bf16.msrb.mxu3 %v1992_v26  ;;  %v1813_v26 = vld [vmem:[#allocation2 + $0x288] sm:$0xf0]  ;;  %v2016_v16 = vor.u32 %v2323_v13, %v2013_v15  ;;  %v2342_v15 = vld [vmem:[#allocation4 + $0xa4] sm:$0xf0] }
  0x76   :  { %1006 = vmatpush.bf16.msrb.mxu0 %v1792_v33  ;;  %v2059_v33 = vld [vmem:[#allocation4 + $0x70] sm:$0xf]  ;;  %v1816_v57 = vor.u32 %v2273_v25, %v1813_v26 }
  0x77   :  { %1019 = vmatpush.bf16.msrb.mxu1 %v1856_v34  ;;  %v2336_v34 = vld [vmem:[#allocation4 + $0x74] sm:$0xf0] }
  0x78   :  { %1032 = vmatpush.bf16.msrb.mxu2 %v1920_v37  ;;  %v1752_v37 = vor.u32 %v2257_v21, %v1749_v24  ;;  %v2060_v43 = vor.u32 %v2336_v34, %v2059_v33  ;;  %v204_v24 = vperm.slane %v2539_v17, 0 }
  0x79   :  { %1045 = vmatpush.bf16.msrb.mxu3 %v1984_v41  ;;  %v1880_v41 = vor.u32 %v2289_v28, %v1877_v29 }
  0x7a   :  { %1007 = vmatpush.bf16.msrb.mxu0 %v1784_v6  ;;  %v2333_v6 = vld [vmem:[#allocation4 + $0x64] sm:$0xf] }
  0x7b   :  { %1020 = vmatpush.bf16.msrb.mxu1 %v1848_v46  ;;  %v2052_v46 = vor.u32 %v2334_v5, %v2051_v45  ;;  %v2352_v45 = vld [vmem:[#allocation4 + $0xf4] sm:$0xf0]  ;;  %v2351_v5 = vld [vmem:[#allocation4 + $0xf4] sm:$0xf] }
  0x7c   :  { %1033 = vmatpush.bf16.msrb.mxu2 %v1912_v7  ;;  %v2053_v7 = vld [vmem:[#allocation4 + $0x68] sm:$0xf0] }
  0x7d   :  { %1046 = vmatpush.bf16.msrb.mxu3 %v1976_v50  ;;  %v2056_v47 = vor.u32 %v2333_v6, %v2053_v7  ;;  %v2331_v50 = vld [vmem:[#allocation4 + $0x54] sm:$0xf]  ;;  %v2115_v7 = vld [vmem:[#allocation4 + $0xe0] sm:$0xf] }
  0x7e   :  { %1008 = vmatpush.bf16.msrb.mxu0 %v1776_v56  ;;  %v2027_v56 = vld [vmem:[#allocation4 + $0x30] sm:$0xf] }
  0x7f   :  { %1021 = vmatpush.bf16.msrb.mxu1 %v1840_v58  ;;  %v2328_v58 = vld [vmem:[#allocation4 + $0x34] sm:$0xf0] }
  0x80   :  { %1034 = vmatpush.bf16.msrb.mxu2 %v1904_v59  ;;  %v2327_v59 = vld [vmem:[#allocation4 + $0x34] sm:$0xf]  ;;  %v2028_v60 = vor.u32 %v2328_v58, %v2027_v56 }
  0x81   :  { %1047 = vmatpush.bf16.msrb.mxu3 %v1968_v63  ;;  %v2032_v62 = vor.u32 %v2327_v59, %v2029_v61  ;;  %v2019_v63 = vld [vmem:[#allocation4 + $0x20] sm:$0xf]  ;;  %v2347_v56 = vld [vmem:[#allocation4 + $0xd4] sm:$0xf] }
  0x82   :  { %1009 = vmatpush.bf16.msrb.mxu0 %v1768_v8  ;;  %v2020_v2 = vor.u32 %v2326_v0, %v2019_v63  ;;  %v2024_v8 = vor.u32 %v2325_v1, %v2021_v3  ;;  %v2346_v63 = vld [vmem:[#allocation4 + $0xc4] sm:$0xf0]  ;;  %v2345_v1 = vld [vmem:[#allocation4 + $0xc4] sm:$0xf] }
  0x83   :  { %1022 = vmatpush.bf16.msrb.mxu1 %v1832_v9 }
  0x84   :  { %1035 = vmatpush.bf16.msrb.mxu2 %v1896_v10 }
  0x85   :  { %1048 = vmatpush.bf16.msrb.mxu3 %v1960_v14  ;;  %v2012_v14 = vor.u32 %v2324_v12, %v2011_v11  ;;  %v2093_v12 = vld [vmem:[#allocation4 + $0xb8] sm:$0xf0] }
  0x86   :  { %1010 = vmatpush.bf16.msrb.mxu0 %v1760_v20  ;;  %v2321_v20 = vld [vmem:[#allocation4 + $0x4] sm:$0xf] }
  0x87   :  { %1023 = vmatpush.bf16.msrb.mxu1 %v1824_v22  ;;  %v2004_v22 = vor.u32 %v2322_v19, %v2003_v18 }
  0x88   :  { %1036 = vmatpush.bf16.msrb.mxu2 %v1888_v23  ;;  %v2005_v23 = vld [vmem:[#allocation4 + $0x8] sm:$0xf0] }
  0x89   :  { %1049 = vmatpush.bf16.msrb.mxu3 %v1952_v27  ;;  %v2008_v26 = vor.u32 %v2321_v20, %v2005_v23  ;;  %v2085_v20 = vld [vmem:[#allocation4 + $0xa8] sm:$0xf0]  ;;  %v2075_v23 = vld [vmem:[#allocation4 + $0x90] sm:$0xf] }
  0x8a   :  { %1011 = vmatpush.bf16.msrb.mxu0 %v1752_v37 }
  0x8b   :  { %1024 = vmatpush.bf16.msrb.mxu1 %v1816_v57 }
  0x8c   :  { %1037 = vmatpush.bf16.msrb.mxu2 %v1880_v41 }
  0x8d   :  { %1050 = vmatpush.bf16.msrb.mxu3 %v1944_v42  ;;  %1012 = vmatmul.bf16.vlgmr.msrb.gmra.mxu0 %v2518_v35  ;;  %v2045_v35 = vld [vmem:[#allocation4 + $0x58] sm:$0xf0] }
  0x8e   :  { %1258 = vmatpush.bf16.msra.mxu0 %v2060_v43  ;;  %1025 = vmatmul.bf16.vlgmr.msrb.gmra.mxu1 %v2522_v40  ;;  %v2048_v40 = vor.u32 %v2331_v50, %v2045_v35  ;;  %v2117_v35 = vld [vmem:[#allocation4 + $0xe8] sm:$0xf0] }
  0x8f   :  { %1038 = vmatmul.bf16.vlgmr.msrb.gmra.mxu2 %v2516_v31  ;;  %v2037_v31 = vld [vmem:[#allocation4 + $0x48] sm:$0xf0] }
  0x90   :  { %1284 = vmatpush.bf16.msra.mxu2 %v2064_v44  ;;  %1051 = vmatmul.bf16.vlgmr.msrb.gmra.mxu3 %v2520_v36  ;;  %v2036_v36 = vor.u32 %v2330_v53, %v2035_v52  ;;  %v2040_v55 = vor.u32 %v2329_v54, %v2037_v31  ;;  %v2123_v44 = vld [vmem:[#allocation4 + $0xf0] sm:$0xf] }
  0x91   :  { %v2124_v6 = vor.u32 %v2352_v45, %v2123_v44 }
  0x92   :  { %1259 = vmatpush.bf16.msra.mxu0 %v2052_v46  ;;  %v2125_v46 = vld [vmem:[#allocation4 + $0xf8] sm:$0xf0] }
  0x93   :  { %v2128_v50 = vor.u32 %v2351_v5, %v2125_v46  ;;  %1271 = vmatpush.bf16.msra.mxu1 %v2124_v6 }
  0x94   :  { %1285 = vmatpush.bf16.msra.mxu2 %v2056_v47  ;;  %v2350_v47 = vld [vmem:[#allocation4 + $0xe4] sm:$0xf0] }
  0x95   :  { %v2116_v53 = vor.u32 %v2350_v47, %v2115_v7  ;;  %1297 = vmatpush.bf16.msra.mxu3 %v2128_v50 }
  0x96   :  { %1260 = vmatpush.bf16.msra.mxu0 %v2044_v51  ;;  %v2349_v51 = vld [vmem:[#allocation4 + $0xe4] sm:$0xf] }
  0x97   :  { %v2120_v54 = vor.u32 %v2349_v51, %v2117_v35  ;;  %1272 = vmatpush.bf16.msra.mxu1 %v2116_v53 }
  0x98   :  { %1286 = vmatpush.bf16.msra.mxu2 %v2048_v40 }
  0x99   :  { %1298 = vmatpush.bf16.msra.mxu3 %v2120_v54 }
  0x9a   :  { %1261 = vmatpush.bf16.msra.mxu0 %v2036_v36  ;;  %v2107_v36 = vld [vmem:[#allocation4 + $0xd0] sm:$0xf] }
  0x9c   :  { %1287 = vmatpush.bf16.msra.mxu2 %v2040_v55  ;;  %v2348_v55 = vld [vmem:[#allocation4 + $0xd4] sm:$0xf0] }
  0x9d   :  { %v2108_v59 = vor.u32 %v2348_v55, %v2107_v36  ;;  %v2360_v55 = vld [vmem:[%s2605_s5 + $0x38] sm:$0xff] }
  0x9e   :  { %1262 = vmatpush.bf16.msra.mxu0 %v2028_v60  ;;  %v2109_v60 = vld [vmem:[#allocation4 + $0xd8] sm:$0xf0] }
  0x9f   :  { %v2112_v0 = vor.u32 %v2347_v56, %v2109_v60  ;;  %1273 = vmatpush.bf16.msra.mxu1 %v2108_v59  ;;  %v2368_v56 = vld [vmem:[%s2605_s5 + $0x78] sm:$0xff]  ;;  %v2367_v59 = vld [vmem:[%s2605_s5 + $0x70] sm:$0xff]  ;;  %v2358_v60 = vld [vmem:[%s2605_s5 + $0x28] sm:$0xff] }
  0xa0   :  { %1288 = vmatpush.bf16.msra.mxu2 %v2032_v62  ;;  %v2099_v62 = vld [vmem:[#allocation4 + $0xc0] sm:$0xf] }
  0xa1   :  { %v2100_v3 = vor.u32 %v2346_v63, %v2099_v62  ;;  %1299 = vmatpush.bf16.msra.mxu3 %v2112_v0  ;;  %v2357_v62 = vld [vmem:[%s2605_s5 + $0x20] sm:$0xff]  ;;  %v2356_v0 = vld [vmem:[%s2605_s5 + $0x18] sm:$0xff] }
  0xa2   :  { %1263 = vmatpush.bf16.msra.mxu0 %v2020_v2  ;;  %v2101_v2 = vld [vmem:[#allocation4 + $0xc8] sm:$0xf0]  ;;  %v2365_v63 = vld [vmem:[%s2605_s5 + $0x60] sm:$0xff] }
  0xa3   :  { %1274 = vmatpush.bf16.msra.mxu1 %v2100_v3  ;;  %v2355_v3 = vld [vmem:[%s2605_s5 + $0x10] sm:$0xff] }
  0xa4   :  { %1289 = vmatpush.bf16.msra.mxu2 %v2024_v8  ;;  %v2091_v8 = vld [vmem:[#allocation4 + $0xb0] sm:$0xf] }
  0xa6   :  { %1264 = vmatpush.bf16.msra.mxu0 %v2012_v14  ;;  %v2083_v14 = vld [vmem:[#allocation4 + $0xa0] sm:$0xf] }
  0xa7   :  { %v2084_v19 = vor.u32 %v2342_v15, %v2083_v14  ;;  %v2361_v14 = vld [vmem:[%s2605_s5 + $0x40] sm:$0xff] }
  0xa8   :  { %1290 = vmatpush.bf16.msra.mxu2 %v2016_v16  ;;  %v2341_v16 = vld [vmem:[#allocation4 + $0xa4] sm:$0xf]  ;;  %v1092_v15 = vld [vmem:[%s2604_s4] sm:$0x3] }
  0xaa   :  { %v857_v4 = vpop.f32.mrf.mxu0  ;;  %1265 = vmatpush.bf16.msra.mxu0 %v2004_v22  ;;  %v2088_v22 = vor.u32 %v2341_v16, %v2085_v20  ;;  %v1094_v16 = vperm.slane %v1092_v15, 0  ;;  %v1095_v20 = vperm.slane %v1092_v15, 1 }
  0xab   :  { %v870_v9 = vpop.f32.mrf.mxu1  ;;  %v858_v29 = vadd.f32 %v857_v4, %v204_v24  ;;  %v2104_v4 = vor.u32 %v2345_v1, %v2101_v2  ;;  %v2340_v24 = vld [vmem:[#allocation4 + $0x94] sm:$0xf0] }
  0xac   :  { %1291 = vmatpush.bf16.msra.mxu2 %v2008_v26  ;;  %v2076_v26 = vor.u32 %v2340_v24, %v2075_v23  ;;  %v2364_v1 = vld [vmem:[%s2605_s5 + $0x58] sm:$0xff] }
  0xad   :  { %v871_v32 = vadd.f32 %v870_v9, %v858_v29  ;;  %1300 = vmatpush.bf16.msra.mxu3 %v2104_v4  ;;  %v2344_v9 = vld [vmem:[#allocation4 + $0xb4] sm:$0xf0] }
  0xae   :  { %v2092_v11 = vor.u32 %v2344_v9, %v2091_v8  ;;  %1446 = vmatpush.bf16.msrb.mxu0 %v2360_v55 }
  0xb0   :  { %1275 = vmatpush.bf16.msra.mxu1 %v2092_v11  ;;  %v2363_v11 = vld [vmem:[%s2605_s5 + $0x50] sm:$0xff] }
  0xb2   :  { %v883_v10 = vpop.f32.mrf.mxu2  ;;  %v859_v25 = vpop.f32.mrf.mxu0 }
  0xb3   :  { %v896_v21 = vpop.f32.mrf.mxu3  ;;  %v872_v27 = vpop.f32.mrf.mxu1  ;;  %v884_v33 = vadd.f32 %v883_v10, %v871_v32  ;;  %v2343_v10 = vld [vmem:[#allocation4 + $0xb4] sm:$0xf]  ;;  %v2067_v32 = vld [vmem:[#allocation4 + $0x80] sm:$0xf] }
  0xb4   :  { %v2096_v13 = vor.u32 %v2343_v10, %v2093_v12  ;;  %1276 = vmatpush.bf16.msra.mxu1 %v2084_v19  ;;  %v2339_v25 = vld [vmem:[#allocation4 + $0x94] sm:$0xf]  ;;  %v2077_v27 = vld [vmem:[#allocation4 + $0x98] sm:$0xf0]  ;;  %v2354_v10 = vld [vmem:[%s2605_s5 + $0x8] sm:$0xff] }
  0xb5   :  { %v897_v34 = vadd.f32 %v896_v21, %v884_v33  ;;  %v2080_v29 = vor.u32 %v2339_v25, %v2077_v27  ;;  %v2338_v33 = vld [vmem:[#allocation4 + $0x84] sm:$0xf0]  ;;  %v2353_v12 = vld [vmem:[%s2605_s5] sm:$0xff] }
  0xb6   :  { %1301 = vmatpush.bf16.msra.mxu3 %v2096_v13  ;;  %v2362_v13 = vld [vmem:[%s2605_s5 + $0x48] sm:$0xff] }
  0xb8   :  { %1277 = vmatpush.bf16.msra.mxu1 %v2076_v26 }
  0xba   :  { %v885_v28 = vpop.f32.mrf.mxu2  ;;  %1302 = vmatpush.bf16.msra.mxu3 %v2088_v22 }
  0xbb   :  { %v898_v30 = vpop.f32.mrf.mxu3 }
  0xbe   :  { %1303 = vmatpush.bf16.msra.mxu3 %v2080_v29 }
  0xca   :  { %v909_v37 = vpop.f32.mrf.mxu0 }
  0xcb   :  { %v910_v38 = vadd.f32 %v909_v37, %v897_v34  ;;  %v922_v39 = vpop.f32.mrf.mxu1  ;;  %v2337_v34 = vld [vmem:[#allocation4 + $0x84] sm:$0xf] }
  0xcd   :  { %v923_v57 = vadd.f32 %v922_v39, %v910_v38  ;;  %v2068_v38 = vor.u32 %v2338_v33, %v2067_v32  ;;  %v2069_v39 = vld [vmem:[#allocation4 + $0x88] sm:$0xf0]  ;;  %v2373_v33 = vld [vmem:[%s2606_s6] ss:$0 sm:$0xff] }
  0xcf   :  { %1278 = vmatpush.bf16.msra.mxu1 %v2068_v38 }
  0xd2   :  { %v935_v41 = vpop.f32.mrf.mxu2  ;;  %v911_v49 = vpop.f32.mrf.mxu0 }
  0xd3   :  { %v936_v42 = vadd.f32 %v935_v41, %v923_v57  ;;  %v948_v43 = vpop.f32.mrf.mxu3  ;;  %v924_v52 = vpop.f32.mrf.mxu1  ;;  %v2072_v41 = vor.u32 %v2337_v34, %v2069_v39  ;;  %1459 = vmatpush.bf16.msrb.mxu1 %v2368_v56 }
  0xd5   :  { %v949_v48 = vadd.f32 %v948_v43, %v936_v42  ;;  %1304 = vmatpush.bf16.msra.mxu3 %v2072_v41  ;;  %v205_v42 = vperm.slane %v2539_v17, 1 }
  0xd7   :  { %v1056_v40 = vmax.f32 %v949_v48, 0.0  ;;  %1460 = vmatpush.bf16.msrb.mxu1 %v2367_v59 }
  0xd9   :  { %v1058_v31 = vpack.c.bf16 %v1056_v40, %v1056_v40 }
  0xda   :  { %v937_v58 = vpop.f32.mrf.mxu2 }
  0xdb   :  { %1266 = vmatmul.bf16.vlgmr.msra.gmra.mxu0 %v1058_v31  ;;  %1292 = vmatmul.bf16.vlgmr.msra.gmra.mxu2 %v1058_v31  ;;  %v950_v61 = vpop.f32.mrf.mxu3  ;;  %v2359_v58 = vld [vmem:[%s2605_s5 + $0x30] sm:$0xff] }
  0xdc   :  { %1447 = vmatpush.bf16.msrb.mxu0 %v2359_v58  ;;  %v2366_v61 = vld [vmem:[%s2605_s5 + $0x68] sm:$0xff] }
  0xdd   :  { %1461 = vmatpush.bf16.msrb.mxu1 %v2366_v61 }
  0xe0   :  { %1448 = vmatpush.bf16.msrb.mxu0 %v2358_v60 }
  0xe1   :  { %1462 = vmatpush.bf16.msrb.mxu1 %v2365_v63 }
  0xe4   :  { %1449 = vmatpush.bf16.msrb.mxu0 %v2357_v62 }
  0xe5   :  { %1463 = vmatpush.bf16.msrb.mxu1 %v2364_v1 }
  0xe8   :  { %1450 = vmatpush.bf16.msrb.mxu0 %v2356_v0 }
  0xe9   :  { %1464 = vmatpush.bf16.msrb.mxu1 %v2363_v11 }
  0xea   :  { %v961_v18 = vpop.f32.mrf.mxu0 }
  0xeb   :  { %v974_v21 = vpop.f32.mrf.mxu1  ;;  %v962_v45 = vadd.f32 %v961_v18, %v205_v42 }
  0xec   :  { %1451 = vmatpush.bf16.msrb.mxu0 %v2355_v3 }
  0xed   :  { %v975_v5 = vadd.f32 %v974_v21, %v962_v45  ;;  %1465 = vmatpush.bf16.msrb.mxu1 %v2362_v13 }
  0xf0   :  { %1452 = vmatpush.bf16.msrb.mxu0 %v2354_v10 }
  0xf1   :  { %1466 = vmatpush.bf16.msrb.mxu1 %v2361_v14 }
  0xf2   :  { %v987_v28 = vpop.f32.mrf.mxu2  ;;  %v963_v37 = vpop.f32.mrf.mxu0 }
  0xf3   :  { %v1000_v30 = vpop.f32.mrf.mxu3  ;;  %v976_v57 = vpop.f32.mrf.mxu1  ;;  %v988_v6 = vadd.f32 %v987_v28, %v975_v5 }
  0xf4   :  { %1453 = vmatpush.bf16.msrb.mxu0 %v2353_v12 }
  0xf5   :  { %v1001_v46 = vadd.f32 %v1000_v30, %v988_v6 }
  0xfa   :  { %v989_v43 = vpop.f32.mrf.mxu2 }
  0xfb   :  { %v1002_v44 = vpop.f32.mrf.mxu3 }
 0x10a   :  { %v1013_v7 = vpop.f32.mrf.mxu0 }
 0x10b   :  { %v1026_v47 = vpop.f32.mrf.mxu1  ;;  %v1014_v48 = vadd.f32 %v1013_v7, %v1001_v46 }
 0x10d   :  { %v1027_v49 = vadd.f32 %v1026_v47, %v1014_v48 }
 0x112   :  { %v1039_v50 = vpop.f32.mrf.mxu2  ;;  %v1015_v52 = vpop.f32.mrf.mxu0 }
 0x113   :  { %v1040_v51 = vadd.f32 %v1039_v50, %v1027_v49  ;;  %v1052_v35 = vpop.f32.mrf.mxu3  ;;  %v1028_v53 = vpop.f32.mrf.mxu1 }
 0x115   :  { %v1053_v40 = vadd.f32 %v1052_v35, %v1040_v51 }
 0x117   :  { %v1057_v54 = vmax.f32 %v1053_v40, 0.0 }
 0x119   :  { %v1059_v31 = vpack.c.bf16 %v1057_v54, %v1057_v54 }
 0x11a   :  { %v1041_v36 = vpop.f32.mrf.mxu2 }
 0x11b   :  { %v1054_v17 = vpop.f32.mrf.mxu3  ;;  %1279 = vmatmul.bf16.vlgmr.msra.gmra.mxu1 %v1059_v31  ;;  %1305 = vmatmul.bf16.vlgmr.msra.gmra.mxu3 %v1059_v31 }
 0x158   :  { %v1267_v2 = vpop.f32.mrf.mxu0 }
 0x159   :  { %v1268_v18 = vadd.f32 %v1267_v2, %v1094_v16 }
 0x15e   :  { %v1293_v4 = vpop.f32.mrf.mxu2 }
 0x15f   :  { %v1294_v23 = vadd.f32 %v1293_v4, %v1095_v20 }
 0x160   :  { %v1269_v8 = vpop.f32.mrf.mxu0 }
 0x166   :  { %v1295_v9 = vpop.f32.mrf.mxu2 }
 0x198   :  { %v1280_v19 = vpop.f32.mrf.mxu1 }
 0x199   :  { %v1281_v21 = vadd.f32 %v1280_v19, %v1268_v18 }
 0x19b   :  { %v1310_v22 = vmax.f32 %v1281_v21, 0.0 }
 0x19d   :  { %v1312_v24 = vpack.c.bf16 %v1310_v22, %v1310_v22 }
 0x19e   :  { %v1306_v25 = vpop.f32.mrf.mxu3 }
 0x19f   :  { %v1307_v26 = vadd.f32 %v1306_v25, %v1294_v23  ;;  %1454 = vmatmul.bf16.vlgmr.msrb.gmra.mxu0 %v1312_v24 }
 0x1a0   :  { %v1282_v27 = vpop.f32.mrf.mxu1 }
 0x1a1   :  { %v1311_v28 = vmax.f32 %v1307_v26, 0.0 }
 0x1a3   :  { %v1313_v29 = vpack.c.bf16 %v1311_v28, %v1311_v28 }
 0x1a5   :  { %1467 = vmatmul.bf16.vlgmr.msrb.gmra.mxu1 %v1313_v29 }
 0x1a6   :  { %v1308_v30 = vpop.f32.mrf.mxu3 }
 0x21c   :  { %v1455_v32 = vpop.f32.mrf.mxu0 }
 0x21d   :  { %v1456_v34 = vadd.f32 %v2373_v33, %v1455_v32 }
 0x222   :  { %v1468_v37 = vpop.f32.mrf.mxu1 }
 0x223   :  { %v1469_v38 = vadd.f32 %v1468_v37, %v1456_v34 }
 0x224   :  { %v1457_v39 = vpop.f32.mrf.mxu0 }
 0x225   :  { %1472 = vmax.xlane.f32.xlu0 %v1469_v38 }
 0x22a   :  { %v1470_v57 = vpop.f32.mrf.mxu1 }
 0x298   :  { %v1473_v41 = vpop.xlane.xlu0 %1472 }
 0x299   :  { %v1474_v42 = vsub.f32 %v1469_v38, %v1473_v41 }
 0x29b   :  { %v1475_v43 = vmul.f32 1.442695, %v1474_v42 }
 0x29d   :  { %2374 = vpow2.f32 %v1475_v43 }
 0x2a3   :  { %v2375_v44 = vpop.eup %2374 }
 0x2a4   :  { %1477 = vadd.xlane.f32.xlu0 %v2375_v44 }
 0x317   :  { %v1478_v45 = vpop.xlane.xlu0 %1477 }
 0x318   :  { %2376 = vlog2.f32 %v1478_v45 }
 0x31e   :  { %v2377_v5 = vpop.eup %2376 }
 0x31f   :  { %v1480_v6 = vmul.f32 0.6931472, %v2377_v5 }
 0x321   :  { %v1481_v46 = vsub.f32 %v1474_v42, %v1480_v6 }
 0x323   :  { %1482 = vst [vmem:[%s2607_s7] sm:$0xff] %v1481_v46 }
 0x324   :  { %1487 = vsyncpa [#allocation3], 1 }
 0x325   :  { %1488 = vsyncpa [#allocation5], 1 }

</bundles_post_ra>
